<compile_context>
chip_gen: v6e
topology: v6e:2x2x1
jax: 0.10.0
libtpu: 0.0.40
codegen_flags: <defaults>
</compile_context>

<pallas_src>
import jax
import jax.numpy as jnp
from jax.experimental import pallas as pl
from jax.experimental.pallas import tpu as pltpu


def _sdf_sphere_kernel(r_ref, p_ref, out_ref):
    # r_ref:   SMEM (1,)            -- sphere radius parameter
    # p_ref:   VMEM (D, tile_n)     -- coordinate-major block of points
    # out_ref: VMEM (1, tile_n)     -- per-point SDF values (lane-dense)
    p = p_ref[...].astype(jnp.float32)              # bf16 upcasts in-register
    sq = jnp.sum(p * p, axis=0, keepdims=True)      # sublane reduce over D (VPU)
    out_ref[...] = jnp.sqrt(sq) - jnp.abs(r_ref[0])  # sqrt -> EUP, sub -> VPU


def _round_up(x: int, m: int) -> int:
    return ((x + m - 1) // m) * m


def _pick_tile_n(
    n: int,
    *,
    min_tile_n: int = 8192,
    max_tile_n: int = 65536,
    min_steps: int = 8,
) -> int:
    """Lane-axis tile width: amortize per-step overhead, keep >=min_steps steps."""
    # Aim for >= min_steps grid steps on large inputs (keeps both v7x TCs busy).
    tile = _round_up(pl.cdiv(n, min_steps), 128)
    # But never below min_tile_n: per-step HBM traffic is ~16*tile bytes and
    # must amortize the ~0.35 us per-grid-step overhead.
    tile = max(tile, min_tile_n)
    # Never above max_tile_n (VMEM ~128*tile bytes double-buffered) or the
    # lane-rounded problem size.
    tile = min(tile, max_tile_n, _round_up(n, 128))
    return max(tile, 128)


def sdf_sphere_forward_coord_major(
    p_cm: jax.Array,
    r: jax.Array,
    *,
    min_tile_n: int = 8192,
    max_tile_n: int = 65536,
    min_steps: int = 8,
) -> dict:
    """Pallas sdf_sphere on coordinate-major points.

    Args:
      p_cm: (D, N) array of query points (coordinate-major; no transpose done
        here — produce data in this layout upstream to avoid an extra HBM pass).
        f32 or bf16; bf16 stays bf16 on the wire and is upcast in-kernel.
      r: (1,) sphere radius parameter.

    Returns:
      dict with 'model_in' (p_cm unchanged) and 'model_out' of shape (N,), f32.
    """
    d, n = p_cm.shape
    r_f32 = jnp.asarray(r, dtype=jnp.float32).reshape(1)

    tile_n = _pick_tile_n(
        n, min_tile_n=min_tile_n, max_tile_n=max_tile_n, min_steps=min_steps
    )
    grid = (pl.cdiv(n, tile_n),)  # ragged last block: reads padded, stores clipped

    # VMEM footprint (8-sublane granules): input block ~32*tile_n B + output
    # block ~32*tile_n B, x2 double-buffered ~= 128*tile_n B total.
    compiler_kwargs = dict(dimension_semantics=("parallel",))
    est_vmem_bytes = 128 * tile_n
    if est_vmem_bytes > 12 * 1024 * 1024:  # only needed if tile raised past default
        compiler_kwargs["vmem_limit_bytes"] = est_vmem_bytes + (4 << 20)

    out_2d = pl.pallas_call(
        _sdf_sphere_kernel,
        out_shape=jax.ShapeDtypeStruct((1, n), jnp.float32),
        grid_spec=pltpu.PrefetchScalarGridSpec(
            num_scalar_prefetch=0,
            grid=grid,
            in_specs=[
                # radius parameter: whole (1,) array in SMEM, no tiling
                pl.BlockSpec(memory_space=pltpu.MemorySpace.SMEM),
                # points: full (small) coordinate dim on sublanes, tile over N lanes
                pl.BlockSpec((d, tile_n), lambda i: (0, i)),
            ],
            # lane-dense output block; final block clipped on store (no pad needed)
            out_specs=pl.BlockSpec((1, tile_n), lambda i: (0, i)),
        ),
        compiler_params=pltpu.CompilerParams(**compiler_kwargs),
    )(r_f32, p_cm)

    model_out = out_2d.reshape(n)  # (1, N) -> (N,): free metadata reshape, no slice
    return {"model_in": p_cm, "model_out": model_out}


def sdf_sphere_forward(p: jax.Array, r: jax.Array, *, mode: str = "auto", **kw) -> dict:
    """Module-layout entry point: p is (N, D), exactly like the PyTorch module.

    mode:
      "auto" / "xla": fused XLA reduction.  For row-major (N, D) input the
        Pallas path would need a wrapper transpose (~24 B/point extra HBM
        traffic, more than the kernel's own ~16 B/point), so plain XLA is the
        right default at every N.  Use sdf_sphere_forward_coord_major when the
        data can be produced coordinate-major upstream.
      "pallas": force the Pallas kernel (explicit transpose) — for
        benchmarking the crossover only.
    """
    # TODO(synk): p.requires_grad in the PyTorch module is an autograd flag, not
    # forward computation; JAX differentiation is functional (jax.grad), so it
    # has no kernel equivalent.
    n, d = p.shape
    r_f32 = jnp.asarray(r, dtype=jnp.float32).reshape(1)

    if mode in ("auto", "xla"):
        model_out = jnp.linalg.norm(p.astype(jnp.float32), axis=1) - jnp.abs(r_f32[0])
        return {"model_in": p, "model_out": model_out}

    assert mode == "pallas", f"unknown mode: {mode}"
    # Explicit transpose: an extra HBM read+write pass. Benchmark-only.
    out = sdf_sphere_forward_coord_major(jnp.transpose(p), r_f32, **kw)
    return {"model_in": p, "model_out": out["model_out"]}


if __name__ == "__main__":
    D = 3
    r = jnp.array([1.0], dtype=jnp.float32)  # module default r=1.0

    # --- 1) Coordinate-major (D, N) input: the Pallas fast path. --------------
    # N is not a multiple of the tile, so the ragged last block (no jnp.pad,
    # no tail-slice copy) is exercised: tile_n=8192 -> 3 grid steps, last ragged.
    N = 20000
    p_cm = jax.random.normal(jax.random.PRNGKey(0), (D, N), dtype=jnp.float32)
    out = sdf_sphere_forward_coord_major(p_cm, r)
    jax.block_until_ready(out["model_out"])
    ref = jnp.linalg.norm(p_cm, axis=0) - jnp.abs(r[0])
    assert out["model_out"].shape == (N,)
    assert jnp.allclose(out["model_out"], ref, atol=1e-5, rtol=1e-5)

    # --- 2) bf16 input: stays bf16 on the wire, upcast happens in-kernel. -----
    p_bf16 = p_cm.astype(jnp.bfloat16)
    out_bf16 = sdf_sphere_forward_coord_major(p_bf16, r)
    jax.block_until_ready(out_bf16["model_out"])
    ref_bf16 = jnp.linalg.norm(p_bf16.astype(jnp.float32), axis=0) - jnp.abs(r[0])
    assert jnp.allclose(out_bf16["model_out"], ref_bf16, atol=1e-4, rtol=1e-4)

    # --- 3) Module layout (N, D): auto -> fused XLA; "pallas" forces kernel. --
    p_nd = jax.random.normal(jax.random.PRNGKey(1), (N, D), dtype=jnp.float32)
    out_auto = sdf_sphere_forward(p_nd, r)                    # XLA fused path
    out_forced = sdf_sphere_forward(p_nd, r, mode="pallas")   # transpose + kernel
    jax.block_until_ready((out_auto["model_out"], out_forced["model_out"]))
    ref_nd = jnp.linalg.norm(p_nd, axis=1) - jnp.abs(r[0])
    assert jnp.allclose(out_auto["model_out"], ref_nd, atol=1e-5, rtol=1e-5)
    assert jnp.allclose(out_forced["model_out"], ref_nd, atol=1e-5, rtol=1e-5)

    print("KERNEL_OK")
</pallas_src>

<mosaic_0001>
module attributes {stable_mosaic.version = 11 : i64} {
  func.func @_sdf_sphere_kernel(%arg0: i32, %arg1: memref<1xf32, #tpu.memory_space<smem>>, %arg2: memref<3x8192xf32, #tpu.memory_space<vmem>>, %arg3: memref<1x8192xf32, #tpu.memory_space<vmem>>) attributes {dimension_semantics = [#tpu.dimension_semantics<parallel>], iteration_bounds = array<i64: 3>, scalar_prefetch = 0 : i64, scratch_operands = 0 : i64, tpu.core_type = #tpu.core_type<tc>, window_params = [{transform_indices = @transform_0, window_bounds = array<i64: 1>}, {transform_indices = @transform_1, window_bounds = array<i64: 3, 8192>}, {transform_indices = @transform_2, window_bounds = array<i64: 1, 8192>}]} {
    %c0 = arith.constant 0 : index
    %c0_0 = arith.constant 0 : index
    %0 = vector.load %arg2[%c0, %c0_0] : memref<3x8192xf32, #tpu.memory_space<vmem>>, vector<3x8192xf32>
    %1 = arith.mulf %0, %0 : vector<3x8192xf32>
    %cst = arith.constant dense<0.000000e+00> : vector<8192xf32>
    %2 = vector.multi_reduction <add>, %1, %cst [0] : vector<3x8192xf32> to vector<8192xf32>
    %3 = vector.shape_cast %2 : vector<8192xf32> to vector<1x8192xf32>
    %4 = math.sqrt %3 : vector<1x8192xf32>
    %c0_1 = arith.constant 0 : index
    %5 = memref.load %arg1[%c0_1] : memref<1xf32, #tpu.memory_space<smem>>
    %6 = math.absf %5 : f32
    %7 = vector.broadcast %6 : f32 to vector<1x8192xf32>
    %8 = arith.subf %4, %7 : vector<1x8192xf32>
    %c0_2 = arith.constant 0 : index
    %c0_3 = arith.constant 0 : index
    %9 = vector.load %arg3[%c0_2, %c0_3] : memref<1x8192xf32, #tpu.memory_space<vmem>>, vector<1x8192xf32>
    tpu.vector_store %arg3[%c0_2, %c0_3], %8 {strides = array<i32>} : memref<1x8192xf32, #tpu.memory_space<vmem>>, vector<1x8192xf32>,
    return
  }
  func.func @transform_0(%arg0: i32) -> i32 {
    %c0_i32 = arith.constant 0 : i32
    %c0_i32_0 = arith.constant 0 : i32
    return %c0_i32 : i32
  }
  func.func @transform_1(%arg0: i32) -> (i32, i32) {
    %c0_i32 = arith.constant 0 : i32
    %c0_i32_0 = arith.constant 0 : i32
    return %c0_i32, %arg0 : i32, i32
  }
  func.func @transform_2(%arg0: i32) -> (i32, i32) {
    %c0_i32 = arith.constant 0 : i32
    %c0_i32_0 = arith.constant 0 : i32
    return %c0_i32, %arg0 : i32, i32
  }
}

</mosaic_0001>

<bundles_post_ra>
// kernel: tpu_custom_call.1
= control target key start
LH: loop header
LB: loop body
LE: loop exit
PB: predicated region body
PF: predicated region fallthrough
CT: control target
= control target key end

     0   :  { %s3965_s0 = inlined_call_operand.<no memory space> [shape: f32[1], index: 0, kind: input, shape index: {}]   ;;  %s3966_s1 = inlined_call_operand.hbm [shape: f32[3,20000], index: 1, kind: input, shape index: {}]   ;;  %s3967_s2 = inlined_call_operand.hbm [shape: f32[1,20000], index: 2, kind: output, shape index: {}]  }
   0x1   :  { %7 = sst [smem:[#allocation2]] %s3965_s0 }
   0x2   :  { %8 = vsyncpa [#allocation4], 0 }
   0x3   :  { %10 = vsyncpa [#allocation4 + $0x1], 0 }
   0x4   :  { %11 = vsyncpa [#allocation5], 0 }
   0x5   :  { %13 = vsyncpa [#allocation5 + $0x1], 0  ;;  %s2166_s11 = smov 0   ;;  %s2168_s12 = smov 0  }
   0x6   :  { %s2170_s13 = smov 0   ;;  %s2172_s14 = smov 0  }
   0x7 LB: > { %s2187_s0 = sadd.s32 4294967295, %s2143_s14   ;;  %s1863_s15 = sadd.s32 4294967294, %s2143_s14   ;;  %s2143_s14 = sphi %s2172_s14, %s4303_s14   ;;  %s2139_s13 = sphi %s2170_s13, %s4302_s13   ;;  %s2135_s12 = sphi %s2168_s12, %s4301_s12   ;;  %s2131_s11 = sphi %s2166_s11, %s4300_s11  }
   0x8   : > { %s2191_s16 = sadd.s32 1, %s2143_s14   ;;  %s47_s17 = sadd.s32 1, %s2139_s13 }
   0x9   : > { %s44_s18 = ssub.s32 %s2143_s14, %s2191_s16  ;;  %p54_p0 = scmp.ne.s32.totalorder %s2139_s13, %s2135_s12 }
   0xa   : > { %p45_p1 = scmp.eq.s32.totalorder %s44_s18, 0  ;;  %p55_p2 = scmp.eq.s32.totalorder %s2143_s14, 0 }
   0xb   : > { %p60_p3 = scmp.ne.s32.totalorder %s2135_s12, %s2131_s11  ;;  %p61_p4 = scmp.eq.s32.totalorder %s2187_s0, 0 }
   0xc   : > { %s2203_s19 = scalar_select %p45_p1, %s2139_s13, %s47_s17  }
   0xd   : > { %p56_p5 = por %p55_p2, %p54_p0  ;;  %p2205_p6 = por %p61_p4, %p60_p3 }
   0xe   : > { %p84_p7 = scmp.eq.s32.totalorder %s2187_s0, 2  ;;  %p90_p8 = scmp.eq.s32.totalorder %s1863_s15, 2 }
   0xf   : > { %p1865_p11 = scmp.ge.s32.totalorder %s2143_s14, 3 }
  0x10   : > { %p2210_p9 = por %p84_p7, %p54_p0  ;;  %p2214_p10 = por %p90_p8, %p60_p3 }
  0x11   : > { %109 = sbr.rel (%p1865_p11) target bundleno = 53 (0x35), region = 20 }
  0x12   : > { %s4034_s21 = scalar_select %p2210_p9, 1, 0 }
  0x13   : > { %s4035_s22 = scalar_select %p2214_p10, 1, 0 }
  0x16   : > { %112 = sbr.rel (!%p56_p5) target bundleno = 53 (0x35), region = 24  ;;  %s113_s23 = sand.u32 (%p56_p5), 1, %s2139_s13  }
  0x17   : > { %s1867_s24 = sshll.u32 (%p56_p5), %s2143_s14, 6  ;;  %s1866_s25 = sshll.u32 (%p56_p5), %s113_s23, 8 }
  0x18   : > { %s119_s26 = ssub.s32 (%p56_p5), 157, %s1867_s24  ;;  %s2224_s29 = scalar_lea.sflag (%p56_p5), [#allocation4], %s113_s23 }
  0x19   : > { %p120_p12 = scmp.lt.s32.totalorder (%p56_p5), %s119_s26, 64  ;;  %s117_s30 = scalar_lea.vmem (%p56_p5), [#allocation3], %s1866_s25 }
  0x1b   : > { %s4305_s26 = smov (!%p120_p12, %s119_s26), 64 }
  0x1c   : > { %s2221_s27 = sshll.u32 %s4305_s26, 6 }
  0x1d   : > { %s124_s28 = ssub.s32 4096, %s2221_s27 }
  0x1e   : > { %125 = vsyncadd %s2224_s29, %s124_s28  ;;  %p1869_p13 = scmp.ne.s32.totalorder %s2221_s27, 0  ;;  %s1883_s3 = sshll.u32 %s2143_s14, 12 }
  0x1f   : > { %s128_s6 = scalar_lea.hbm %s3966_s1, %s1883_s3  ;;  %s131_s7 = sshll.u32 %s117_s30, 4  ;;  %s132_s7 = int_to_ptr.vmem [resolvable:$true] %s131_s7 }
  0x20   : > { %s2053_s8 = scalar_lea.hbm %s128_s6, %s2221_s27  ;;  %s2057_s15 = scalar_lea.hbm %s3966_s1, 10048 }
  0x21   : > { %p2054_p0 = scmp.ne.s32.totalorder %s128_s6, %s2053_s8  ;;  %p2058_p3 = scmp.lt.s32.totalorder %s128_s6, %s3966_s1 }
  0x22   : > { %p2059_p4 = scmp.lt.s32.totalorder %s2057_s15, %s2053_s8 }
  0x23   : > { %p2055_p1 = pnand %p2054_p0, %p1869_p13 }
  0x24   : > { %p2060_p5 = por %p2059_p4, %p2058_p3 }
  0x25   : > { %p2056_p2 = pneg %p2055_p1 }
  0x27   : > { %p2061_p7 = pnand %p2060_p5, %p2056_p2 }
  0x29   : > { %2064 = shalt.err (!%p2061_p7)
}
  0x2a   : > { %s2065_s23 = scalar_lea.vmem %s132_s7, %s2221_s27  ;;  %s2145_s24 = smov [#allocation3]  }
  0x2b   : > { %p2066_p8 = scmp.ne.s32.totalorder %s132_s7, %s2065_s23  ;;  %s2069_s25 = sshll.u32 %s2145_s24, 4  ;;  %s2070_s25 = int_to_ptr.vmem [resolvable:$false] %s2069_s25 }
  0x2c   : > { %s2071_s26 = scalar_lea.vmem %s2070_s25, 8192  ;;  %p2072_p0 = scmp.lt.s32.totalorder %s132_s7, %s2070_s25 }
  0x2d   : > { %p2067_p11 = pnand %p2066_p8, %p1869_p13  ;;  %p2073_p1 = scmp.lt.s32.totalorder %s2071_s26, %s2065_s23 }
  0x2f   : > { %p2068_p12 = pneg %p2067_p11  ;;  %p2074_p10 = por %p2073_p1, %p2072_p0 }
  0x31   : > { %p2075_p9 = pnand %p2074_p10, %p2068_p12 }
  0x33   : > { %2078 = shalt.err (!%p2075_p9)
}
  0x34   : > { %134 = dma.hbm_to_vmem [thread:$0]  (%p1869_p13), %s128_s6, %s2221_s27, %s132_s7, %s2224_s29  }
  0x35 PF: > { %p1873_p2 = scmp.ge.s32.totalorder %s2143_s14, 1  ;;  %p136_p3 = scmp.lt.s32.totalorder %s2143_s14, 4 }
  0x37   : > { %p137_p4 = pnand %p1873_p2, %p136_p3 }
  0x39   : > { %140 = sbr.rel (%p137_p4) target bundleno = 388 (0x184), region = 28 }
  0x3e   : > { %s2251_s28 = sand.u32 1, %s2135_s12  }
  0x3f   : > { %s1874_s30 = sshll.u32 %s2251_s28, 8  ;;  %s143_s3 = scalar_lea.sflag [#allocation4], %s2251_s28 }
  0x40   : > { %s2255_s4 = scalar_lea.vmem [#allocation3], %s1874_s30 }
  0x41   : > { %2122 = dma.done.wait (%p2205_p6), %s143_s3, 4096  }
  0x42   : > { %2124 = vsyncadd (%p2205_p6), %s143_s3, 4294963200  ;;  %v177_v0 = vld [vmem:[%s2255_s4] sm:$0x77]  ;;  %v178_v1 = vld [vmem:[%s2255_s4 + $0x8] sm:$0x77]  ;;  %vm337_vm0 = vcmask 1042432  }
  0x43   : > { %v179_v2 = vld [vmem:[%s2255_s4 + $0x10] sm:$0x77]  ;;  %v180_v3 = vld [vmem:[%s2255_s4 + $0x18] sm:$0x77]  ;;  %v181_v4 = vld [vmem:[%s2255_s4 + $0x20] sm:$0x77]  ;;  %v2267_v6 = vmul.f32 %v177_v0, %v177_v0  ;;  %v2272_v10 = vmul.f32 %v178_v1, %v178_v1 }
  0x44   : > { %v182_v5 = vld [vmem:[%s2255_s4 + $0x28] sm:$0x77]  ;;  %v183_v7 = vld [vmem:[%s2255_s4 + $0x30] sm:$0x77]  ;;  %v184_v8 = vld [vmem:[%s2255_s4 + $0x38] sm:$0x77]  ;;  %v2277_v14 = vmul.f32 %v179_v2, %v179_v2  ;;  %v2282_v18 = vmul.f32 %v180_v3, %v180_v3  ;;  %v2284_v19 = vmul.f32 %v181_v4, %v181_v4 }
  0x45   : > { %v185_v9 = vld [vmem:[%s2255_s4 + $0x40] sm:$0x77]  ;;  %v186_v11 = vld [vmem:[%s2255_s4 + $0x48] sm:$0x77]  ;;  %v187_v12 = vld [vmem:[%s2255_s4 + $0x50] sm:$0x77]  ;;  %v2286_v20 = vmul.f32 %v182_v5, %v182_v5  ;;  %v2291_v24 = vmul.f32 %v183_v7, %v183_v7  ;;  %v2293_v25 = vmul.f32 %v184_v8, %v184_v8  ;;  %v273_v27 = vcombine.high %v2267_v6, %v2267_v6 }
  0x46   : > { %v188_v13 = vld [vmem:[%s2255_s4 + $0x58] sm:$0x77]  ;;  %v189_v15 = vld [vmem:[%s2255_s4 + $0x60] sm:$0x77]  ;;  %v190_v16 = vld [vmem:[%s2255_s4 + $0x68] sm:$0x77]  ;;  %v2295_v26 = vmul.f32 %v185_v9, %v185_v9  ;;  %v2302_v31 = vmul.f32 %v186_v11, %v186_v11  ;;  %v2304_v32 = vmul.f32 %v187_v12, %v187_v12  ;;  %v274_v34 = vcombine.high %v2272_v10, %v2272_v10 }
  0x47   : > { %v191_v17 = vld [vmem:[%s2255_s4 + $0x70] sm:$0x77]  ;;  %v192_v21 = vld [vmem:[%s2255_s4 + $0x78] sm:$0x77]  ;;  %v193_v22 = vld [vmem:[%s2255_s4 + $0x80] sm:$0x77]  ;;  %v2306_v33 = vmul.f32 %v188_v13, %v188_v13  ;;  %v2313_v38 = vmul.f32 %v189_v15, %v189_v15  ;;  %v2315_v39 = vmul.f32 %v190_v16, %v190_v16  ;;  %v275_v41 = vcombine.high %v2277_v14, %v2277_v14 }
  0x48   : > { %v194_v23 = vld [vmem:[%s2255_s4 + $0x88] sm:$0x77]  ;;  %v195_v28 = vld [vmem:[%s2255_s4 + $0x90] sm:$0x77]  ;;  %v196_v29 = vld [vmem:[%s2255_s4 + $0x98] sm:$0x77]  ;;  %v2317_v40 = vmul.f32 %v191_v17, %v191_v17  ;;  %v2324_v45 = vmul.f32 %v192_v21, %v192_v21  ;;  %v2326_v46 = vmul.f32 %v193_v22, %v193_v22  ;;  %v276_v48 = vcombine.high %v2282_v18, %v2282_v18 }
  0x49   : > { %v197_v30 = vld [vmem:[%s2255_s4 + $0xa0] sm:$0x77]  ;;  %v198_v35 = vld [vmem:[%s2255_s4 + $0xa8] sm:$0x77]  ;;  %v199_v36 = vld [vmem:[%s2255_s4 + $0xb0] sm:$0x77]  ;;  %v2328_v47 = vmul.f32 %v194_v23, %v194_v23  ;;  %v2335_v52 = vmul.f32 %v195_v28, %v195_v28  ;;  %v2337_v53 = vmul.f32 %v196_v29, %v196_v29  ;;  %v277_v55 = vcombine.high %v2284_v19, %v2284_v19 }
  0x4a   : > { %v200_v37 = vld [vmem:[%s2255_s4 + $0xb8] sm:$0x77]  ;;  %v201_v42 = vld [vmem:[%s2255_s4 + $0xc0] sm:$0x77]  ;;  %v202_v43 = vld [vmem:[%s2255_s4 + $0xc8] sm:$0x77]  ;;  %v2339_v54 = vmul.f32 %v197_v30, %v197_v30  ;;  %v2345_v58 = vmul.f32 %v198_v35, %v198_v35  ;;  %v2347_v59 = vmul.f32 %v199_v36, %v199_v36  ;;  %v278_v61 = vcombine.high %v2286_v20, %v2286_v20 }
  0x4b   : > { %v203_v44 = vld [vmem:[%s2255_s4 + $0xd0] sm:$0x77]  ;;  %v204_v49 = vld [vmem:[%s2255_s4 + $0xd8] sm:$0x77]  ;;  %v205_v50 = vld [vmem:[%s2255_s4 + $0xe0] sm:$0x77]  ;;  %v2349_v60 = vmul.f32 %v200_v37, %v200_v37  ;;  %v2353_v62 = vmul.f32 %v201_v42, %v201_v42  ;;  %v2355_v63 = vmul.f32 %v202_v43, %v202_v43  ;;  %v279_v1 = vcombine.high %v2291_v24, %v2291_v24 }
  0x4c   : > { %v206_v51 = vld [vmem:[%s2255_s4 + $0xe8] sm:$0x77]  ;;  %v207_v56 = vld [vmem:[%s2255_s4 + $0xf0] sm:$0x77]  ;;  %v208_v57 = vld [vmem:[%s2255_s4 + $0xf8] sm:$0x77]  ;;  %v2357_v0 = vmul.f32 %v203_v44, %v203_v44  ;;  %v2361_v2 = vmul.f32 %v204_v49, %v204_v49  ;;  %v2363_v3 = vmul.f32 %v205_v50, %v205_v50  ;;  %v280_v9 = vcombine.high %v2293_v25, %v2293_v25 }
  0x4d   : > { %4036 = vst [vmem:[#allocation9_spill] sm:$0xff] %v2355_v63  ;;  %v2365_v4 = vmul.f32 %v206_v51, %v206_v51  ;;  %v338_v5 = vsel %vm337_vm0, %v2267_v6, 0.0  ;;  %v2369_v7 = vmul.f32 %v207_v56, %v207_v56  ;;  %v2371_v8 = vmul.f32 %v208_v57, %v208_v57  ;;  %s3407_s20 = sld [smem:[#allocation2]]  ;;  %s1875_s29 = sshll.u32 %s2251_s28, 6 }
  0x4e   : > { %4037 = vst [vmem:[#allocation10_spill] sm:$0xff] %v2357_v0  ;;  %4038 = vst [vmem:[#allocation11_spill] sm:$0xff] %v2361_v2  ;;  %v345_v6 = vsel %vm337_vm0, %v273_v27, 0.0  ;;  %v339_v21 = vrot.slane %v338_v5, 4  ;;  %v352_v22 = vsel %vm337_vm0, %v2272_v10, 0.0  ;;  %v359_v27 = vsel %vm337_vm0, %v274_v34, 0.0 }
  0x4f   : > { %4039 = vst [vmem:[#allocation12_spill] sm:$0xff] %v2363_v3  ;;  %4040 = vst [vmem:[#allocation13_spill] sm:$0xff] %v2365_v4  ;;  %v346_v36 = vrot.slane %v345_v6, 4  ;;  %v366_v10 = vsel %vm337_vm0, %v2277_v14, 0.0  ;;  %v353_v34 = vrot.slane %v352_v22, 4  ;;  %v360_v49 = vrot.slane %v359_v27, 4 }
  0x50   : > { %4041 = vst [vmem:[#allocation14_spill] sm:$0xff] %v2369_v7  ;;  %4042 = vst [vmem:[#allocation15_spill] sm:$0xff] %v2371_v8  ;;  %v340_v44 = vadd.f32 %v339_v21, %v338_v5  ;;  %v373_v50 = vsel %vm337_vm0, %v275_v41, 0.0  ;;  %v380_v51 = vsel %vm337_vm0, %v2282_v18, 0.0  ;;  %v367_v57 = vrot.slane %v366_v10, 4  ;;  %s3830_s5 = scalar_lea.vmem [#allocation6], %s1875_s29 }
  0x51   : > { %v387_v42 = vsel %vm337_vm0, %v276_v48, 0.0  ;;  %v347_v21 = vadd.f32 %v346_v36, %v345_v6  ;;  %v354_v18 = vadd.f32 %v353_v34, %v352_v22  ;;  %v374_v37 = vrot.slane %v373_v50, 4  ;;  %s1774_s6 = scalar_lea.sflag [#allocation5], %s2251_s28  ;;  %p4298_p6 = scmp.ne.s32.totalorder %s4034_s21, 0 }
  0x52   : > { %v381_v35 = vrot.slane %v380_v51, 4  ;;  %v394_v14 = vsel %vm337_vm0, %v2284_v19, 0.0  ;;  %v341_v48 = vrot.slane %v340_v44, 2  ;;  %v361_v30 = vadd.f32 %v360_v49, %v359_v27  ;;  %s1877_s7 = sshll.u32 (%p4298_p6), %s2187_s0, 6 }
  0x53   : > { %v388_v29 = vrot.slane %v387_v42, 4  ;;  %v368_v22 = vadd.f32 %v367_v57, %v366_v10  ;;  %v348_v34 = vrot.slane %v347_v21, 2  ;;  %v395_v41 = vrot.slane %v394_v14, 4  ;;  %s1235_s27 = sand.u32 2147483647, %s3407_s20  ;;  %s1782_s8 = ssub.s32 (%p4298_p6), 157, %s1877_s7 }
  0x54   : > { %v401_v27 = vsel %vm337_vm0, %v277_v55, 0.0  ;;  %v355_v49 = vrot.slane %v354_v18, 2  ;;  %v375_v56 = vadd.f32 %v374_v37, %v373_v50  ;;  %v382_v43 = vadd.f32 %v381_v35, %v380_v51  ;;  %p1783_p9 = scmp.lt.s32.totalorder (%p4298_p6), %s1782_s8, 64 }
  0x55   : > { %v408_v5 = vsel %vm337_vm0, %v2286_v20, 0.0  ;;  %v342_v28 = vadd.f32 %v341_v48, %v340_v44  ;;  %v362_v23 = vrot.slane %v361_v30, 2  ;;  %v389_v6 = vadd.f32 %v388_v29, %v387_v42 }
  0x56   : > { %v415_v10 = vsel %vm337_vm0, %v278_v61, 0.0  ;;  %v369_v57 = vrot.slane %v368_v22, 2  ;;  %v402_v36 = vrot.slane %v401_v27, 4  ;;  %v422_v19 = vsel %vm337_vm0, %v2291_v24, 0.0 }
  0x57   : > { %v429_v55 = vsel %vm337_vm0, %v279_v1, 0.0  ;;  %v396_v35 = vadd.f32 %v395_v41, %v394_v14  ;;  %v409_v37 = vrot.slane %v408_v5, 4  ;;  %v436_v29 = vsel %vm337_vm0, %v2293_v25, 0.0 }
  0x58   : > { %v443_v20 = vsel %vm337_vm0, %v280_v9, 0.0  ;;  %v349_v61 = vadd.f32 %v348_v34, %v347_v21  ;;  %v376_v42 = vrot.slane %v375_v56, 2  ;;  %v383_v44 = vrot.slane %v382_v43, 2 }
  0x59   : > { %v416_v50 = vrot.slane %v415_v10, 4  ;;  %v356_v51 = vadd.f32 %v355_v49, %v354_v18  ;;  %v390_v48 = vrot.slane %v389_v6, 2  ;;  %v423_v17 = vrot.slane %v422_v19, 4 }
  0x5a   : > { %v430_v24 = vrot.slane %v429_v55, 4  ;;  %v363_v16 = vadd.f32 %v362_v23, %v361_v30  ;;  %v370_v1 = vadd.f32 %v369_v57, %v368_v22  ;;  %v437_v14 = vrot.slane %v436_v29, 4 }
  0x5b   : > { %v444_v41 = vrot.slane %v443_v20, 4  ;;  %v343_v15 = vrot.slane %v342_v28, 1  ;;  %v397_v13 = vrot.slane %v396_v35, 2  ;;  %v403_v12 = vadd.f32 %v402_v36, %v401_v27 }
  0x5c   : > { %v410_v11 = vadd.f32 %v409_v37, %v408_v5  ;;  %v350_v8 = vrot.slane %v349_v61, 1  ;;  %v377_v25 = vadd.f32 %v376_v42, %v375_v56  ;;  %v384_v7 = vadd.f32 %v383_v44, %v382_v43 }
  0x5d   : > { %v417_v9 = vadd.f32 %v416_v50, %v415_v10  ;;  %v357_v21 = vrot.slane %v356_v51, 1  ;;  %v391_v34 = vadd.f32 %v390_v48, %v389_v6  ;;  %v424_v4 = vadd.f32 %v423_v17, %v422_v19 }
  0x5e   : > { %v431_v3 = vadd.f32 %v430_v24, %v429_v55  ;;  %v364_v18 = vrot.slane %v363_v16, 1  ;;  %v371_v49 = vrot.slane %v370_v1, 1  ;;  %v438_v2 = vadd.f32 %v437_v14, %v436_v29 }
  0x5f   : > { %v445_v0 = vadd.f32 %v444_v41, %v443_v20  ;;  %v2457_v23 = vadd.f32 %v343_v15, %v342_v28  ;;  %v398_v30 = vadd.f32 %v397_v13, %v396_v35  ;;  %v404_v22 = vrot.slane %v403_v12, 2 }
  0x60   : > { %v411_v57 = vrot.slane %v410_v11, 2  ;;  %v2459_v63 = vadd.f32 %v350_v8, %v349_v61  ;;  %v378_v5 = vrot.slane %v377_v25, 1  ;;  %v385_v36 = vrot.slane %v384_v7, 1 }
  0x61   : > { %v418_v56 = vrot.slane %v417_v9, 2  ;;  %v2461_v43 = vadd.f32 %v357_v21, %v356_v51  ;;  %v392_v27 = vrot.slane %v391_v34, 1  ;;  %v425_v6 = vrot.slane %v424_v4, 2 }
  0x62   : > { %v432_v17 = vrot.slane %v431_v3, 2  ;;  %v2463_v10 = vadd.f32 %v364_v18, %v363_v16  ;;  %v2465_v19 = vadd.f32 %v371_v49, %v370_v1  ;;  %v439_v55 = vrot.slane %v438_v2, 2 }
  0x63   : > { %v446_v15 = vrot.slane %v445_v0, 2  ;;  %v399_v28 = vrot.slane %v398_v30, 1  ;;  %v405_v13 = vadd.f32 %v404_v22, %v403_v12  ;;  %v412_v35 = vadd.f32 %v411_v57, %v410_v11 }
  0x64   : > { %v450_v8 = vsel %vm337_vm0, %v2295_v26, 0.0  ;;  %v2469_v37 = vadd.f32 %v378_v5, %v377_v25  ;;  %v2471_v29 = vadd.f32 %v385_v36, %v384_v7  ;;  %v419_v20 = vadd.f32 %v418_v56, %v417_v9 }
  0x65   : > { %v4043_v61 = vcombine.high %v2295_v26, %v2295_v26  ;;  %v2477_v42 = vadd.f32 %v392_v27, %v391_v34  ;;  %v426_v44 = vadd.f32 %v425_v6, %v424_v4  ;;  %v433_v50 = vadd.f32 %v432_v17, %v431_v3 }
  0x66   : > { %v464_v11 = vsel %vm337_vm0, %v2302_v31, 0.0  ;;  %v440_v12 = vadd.f32 %v439_v55, %v438_v2  ;;  %v447_v51 = vadd.f32 %v446_v15, %v445_v0  ;;  %v451_v48 = vrot.slane %v450_v8, 4 }
  0x67   : > { %v457_v16 = vsel %vm337_vm0, %v4043_v61, 0.0  ;;  %4044 = vst [vmem:[#allocation16_spill] sm:$0xff] %v2477_v42  ;;  %v4045_v7 = vcombine.high %v2302_v31, %v2302_v31  ;;  %v2485_v1 = vadd.f32 %v399_v28, %v398_v30  ;;  %v406_v26 = vrot.slane %v405_v13, 1 }
  0x68   : > { %v413_v14 = vrot.slane %v412_v35, 1  ;;  %v458_v41 = vrot.slane %v457_v16, 4  ;;  %v420_v25 = vrot.slane %v419_v20, 1  ;;  %v465_v9 = vrot.slane %v464_v11, 4 }
  0x69   : > { %v471_v24 = vsel %vm337_vm0, %v4045_v7, 0.0  ;;  %4046 = vst [vmem:[#allocation17_spill] sm:$0xff] %v2485_v1  ;;  %v478_v3 = vsel %vm337_vm0, %v2304_v32, 0.0  ;;  %v4047_v2 = vcombine.high %v2304_v32, %v2304_v32  ;;  %v427_v4 = vrot.slane %v426_v44, 1 }
  0x6a   : > { %v434_v21 = vrot.slane %v433_v50, 1  ;;  %v472_v31 = vrot.slane %v471_v24, 4  ;;  %v492_v34 = vsel %vm337_vm0, %v2306_v33, 0.0  ;;  %v441_v18 = vrot.slane %v440_v12, 1 }
  0x6b   : > { %v485_v0 = vsel %vm337_vm0, %v4047_v2, 0.0  ;;  %v448_v49 = vrot.slane %v447_v51, 1  ;;  %v452_v30 = vadd.f32 %v451_v48, %v450_v8  ;;  %v4048_v22 = vcombine.high %v2306_v33, %v2306_v33 }
  0x6c   : > { %v2499_v5 = vadd.f32 %v406_v26, %v405_v13  ;;  %v459_v36 = vadd.f32 %v458_v41, %v457_v16  ;;  %v479_v32 = vrot.slane %v478_v3, 4  ;;  %v486_v56 = vrot.slane %v485_v0, 4 }
  0x6d   : > { %v499_v57 = vsel %vm337_vm0, %v4048_v22, 0.0  ;;  %v2501_v27 = vadd.f32 %v413_v14, %v412_v35  ;;  %v2503_v6 = vadd.f32 %v420_v25, %v419_v20  ;;  %v466_v17 = vadd.f32 %v465_v9, %v464_v11 }
  0x6e   : > { %4049 = vst [vmem:[#allocation18_spill] sm:$0xff] %v2499_v5  ;;  %v493_v55 = vrot.slane %v492_v34, 4  ;;  %v2505_v15 = vadd.f32 %v427_v4, %v426_v44  ;;  %v2507_v28 = vadd.f32 %v434_v21, %v433_v50  ;;  %v473_v8 = vadd.f32 %v472_v31, %v471_v24 }
  0x6f   : > { %4050 = vst [vmem:[#allocation19_spill] sm:$0xff] %v2501_v27  ;;  %4051 = vst [vmem:[#allocation20_spill] sm:$0xff] %v2503_v6  ;;  %v500_v61 = vrot.slane %v499_v57, 4  ;;  %v2509_v33 = vadd.f32 %v441_v18, %v440_v12  ;;  %v2511_v48 = vadd.f32 %v448_v49, %v447_v51  ;;  %v453_v13 = vrot.slane %v452_v30, 2 }
  0x70   : > { %4052 = vst [vmem:[#allocation21_spill] sm:$0xff] %v2505_v15  ;;  %4053 = vst [vmem:[#allocation22_spill] sm:$0xff] %v2507_v28  ;;  %v506_v16 = vsel %vm337_vm0, %v2313_v38, 0.0  ;;  %v460_v35 = vrot.slane %v459_v36, 2  ;;  %v480_v7 = vadd.f32 %v479_v32, %v478_v3  ;;  %v487_v20 = vadd.f32 %v486_v56, %v485_v0 }
  0x71   : > { %4054 = vst [vmem:[#allocation23_spill] sm:$0xff] %v2509_v33  ;;  %4055 = vst [vmem:[#allocation24_spill] sm:$0xff] %v2511_v48  ;;  %v4056_v11 = vcombine.high %v2313_v38, %v2313_v38  ;;  %v467_v50 = vrot.slane %v466_v17, 2  ;;  %v494_v26 = vadd.f32 %v493_v55, %v492_v34  ;;  %v520_v12 = vsel %vm337_vm0, %v2315_v39, 0.0 }
  0x72   : > { %v4057_v51 = vcombine.high %v2315_v39, %v2315_v39  ;;  %v474_v14 = vrot.slane %v473_v8, 2  ;;  %v501_v41 = vadd.f32 %v500_v61, %v499_v57  ;;  %v507_v25 = vrot.slane %v506_v16, 4 }
  0x73   : > { %v513_v44 = vsel %vm337_vm0, %v4056_v11, 0.0  ;;  %v534_v9 = vsel %vm337_vm0, %v2317_v40, 0.0  ;;  %v4058_v38 = vcombine.high %v2317_v40, %v2317_v40  ;;  %v548_v0 = vsel %vm337_vm0, %v2324_v45, 0.0 }
  0x74   : > { %v527_v24 = vsel %vm337_vm0, %v4057_v51, 0.0  ;;  %v514_v3 = vrot.slane %v513_v44, 4  ;;  %v4059_v39 = vcombine.high %v2324_v45, %v2324_v45  ;;  %v454_v21 = vadd.f32 %v453_v13, %v452_v30 }
  0x75   : > { %v541_v2 = vsel %vm337_vm0, %v4058_v38, 0.0  ;;  %v461_v31 = vadd.f32 %v460_v35, %v459_v36  ;;  %v521_v34 = vrot.slane %v520_v12, 4  ;;  %v528_v18 = vrot.slane %v527_v24, 4 }
  0x76   : > { %v555_v4 = vsel %vm337_vm0, %v4059_v39, 0.0  ;;  %v481_v49 = vrot.slane %v480_v7, 2  ;;  %v488_v22 = vrot.slane %v487_v20, 2  ;;  %v495_v57 = vrot.slane %v494_v26, 2 }
  0x77   : > { %v535_v32 = vrot.slane %v534_v9, 4  ;;  %v468_v56 = vadd.f32 %v467_v50, %v466_v17  ;;  %v542_v40 = vrot.slane %v541_v2, 4  ;;  %v549_v55 = vrot.slane %v548_v0, 4 }
  0x78   : > { %v556_v61 = vrot.slane %v555_v4, 4  ;;  %v475_v11 = vadd.f32 %v474_v14, %v473_v8  ;;  %v502_v51 = vrot.slane %v501_v41, 2  ;;  %v508_v38 = vadd.f32 %v507_v25, %v506_v16 }
  0x79   : > { %v515_v48 = vadd.f32 %v514_v3, %v513_v44  ;;  %v455_v33 = vrot.slane %v454_v21, 1  ;;  %v462_v45 = vrot.slane %v461_v31, 1  ;;  %v522_v28 = vadd.f32 %v521_v34, %v520_v12 }
  0x7a   : > { %v529_v39 = vadd.f32 %v528_v18, %v527_v24  ;;  %v482_v30 = vadd.f32 %v481_v49, %v480_v7  ;;  %v489_v36 = vadd.f32 %v488_v22, %v487_v20  ;;  %v496_v13 = vadd.f32 %v495_v57, %v494_v26 }
  0x7b   : > { %v536_v35 = vadd.f32 %v535_v32, %v534_v9  ;;  %v469_v15 = vrot.slane %v468_v56, 1  ;;  %v543_v6 = vadd.f32 %v542_v40, %v541_v2  ;;  %v550_v27 = vadd.f32 %v549_v55, %v548_v0 }
  0x7c   : > { %v557_v5 = vadd.f32 %v556_v61, %v555_v4  ;;  %v476_v17 = vrot.slane %v475_v11, 1  ;;  %v503_v50 = vadd.f32 %v502_v51, %v501_v41  ;;  %v509_v1 = vrot.slane %v508_v38, 2 }
  0x7d   : > { %v516_v42 = vrot.slane %v515_v48, 2  ;;  %v2537_v8 = vadd.f32 %v455_v33, %v454_v21  ;;  %v2539_v16 = vadd.f32 %v462_v45, %v461_v31  ;;  %v523_v44 = vrot.slane %v522_v28, 2 }
  0x7e   : > { %v530_v14 = vrot.slane %v529_v39, 2  ;;  %v483_v12 = vrot.slane %v482_v30, 1  ;;  %v490_v24 = vrot.slane %v489_v36, 1  ;;  %v497_v7 = vrot.slane %v496_v13, 1 }
  0x7f   : > { %v537_v20 = vrot.slane %v536_v35, 2  ;;  %v2541_v26 = vadd.f32 %v469_v15, %v468_v56  ;;  %v544_v25 = vrot.slane %v543_v6, 2  ;;  %v551_v9 = vrot.slane %v550_v27, 2 }
  0x80   : > { %v558_v3 = vrot.slane %v557_v5, 2  ;;  %v2543_v2 = vadd.f32 %v476_v17, %v475_v11  ;;  %v504_v41 = vrot.slane %v503_v50, 1  ;;  %v510_v0 = vadd.f32 %v509_v1, %v508_v38 }
  0x81   : > { %v517_v4 = vadd.f32 %v516_v42, %v515_v48  ;;  %v524_v33 = vadd.f32 %v523_v44, %v522_v28  ;;  %v531_v21 = vadd.f32 %v530_v14, %v529_v39  ;;  %v562_v31 = vsel %vm337_vm0, %v2326_v46, 0.0 }
  0x82   : > { %v4060_v34 = vcombine.high %v2326_v46, %v2326_v46  ;;  %v2551_v15 = vadd.f32 %v483_v12, %v482_v30  ;;  %v2553_v49 = vadd.f32 %v490_v24, %v489_v36  ;;  %v2555_v22 = vadd.f32 %v497_v7, %v496_v13 }
  0x83   : > { %v538_v57 = vadd.f32 %v537_v20, %v536_v35  ;;  %v545_v32 = vadd.f32 %v544_v25, %v543_v6  ;;  %v552_v1 = vadd.f32 %v551_v9, %v550_v27  ;;  %v559_v42 = vadd.f32 %v558_v3, %v557_v5 }
  0x84   : > { %v569_v18 = vsel %vm337_vm0, %v4060_v34, 0.0  ;;  %v576_v28 = vsel %vm337_vm0, %v2328_v47, 0.0  ;;  %v2559_v48 = vadd.f32 %v504_v41, %v503_v50  ;;  %v511_v56 = vrot.slane %v510_v0, 1 }
  0x85   : > { %v563_v40 = vrot.slane %v562_v31, 4  ;;  %v570_v46 = vrot.slane %v569_v18, 4  ;;  %v518_v55 = vrot.slane %v517_v4, 1  ;;  %v525_v61 = vrot.slane %v524_v33, 1 }
  0x86   : > { %v532_v11 = vrot.slane %v531_v21, 1  ;;  %v4061_v51 = vcombine.high %v2328_v47, %v2328_v47  ;;  %v539_v45 = vrot.slane %v538_v57, 1  ;;  %v577_v6 = vrot.slane %v576_v28, 4 }
  0x87   : > { %v590_v5 = vsel %vm337_vm0, %v2335_v52, 0.0  ;;  %v4062_v27 = vcombine.high %v2335_v52, %v2335_v52  ;;  %v546_v30 = vrot.slane %v545_v32, 1  ;;  %v553_v36 = vrot.slane %v552_v1, 1 }
  0x88   : > { %v583_v38 = vsel %vm337_vm0, %v4061_v51, 0.0  ;;  %v560_v13 = vrot.slane %v559_v42, 1  ;;  %v604_v35 = vsel %vm337_vm0, %v2337_v53, 0.0  ;;  %v2573_v17 = vadd.f32 %v511_v56, %v510_v0 }
  0x89   : > { %v597_v39 = vsel %vm337_vm0, %v4062_v27, 0.0  ;;  %v564_v47 = vadd.f32 %v563_v40, %v562_v31  ;;  %v571_v50 = vadd.f32 %v570_v46, %v569_v18  ;;  %v584_v44 = vrot.slane %v583_v38, 4 }
  0x8a   : > { %4063 = vst [vmem:[#allocation25_spill] sm:$0xff] %v2573_v17  ;;  %v2575_v14 = vadd.f32 %v518_v55, %v517_v4  ;;  %v2577_v12 = vadd.f32 %v525_v61, %v524_v33  ;;  %v591_v24 = vrot.slane %v590_v5, 4  ;;  %v598_v7 = vrot.slane %v597_v39, 4 }
  0x8b   : > { %v2579_v52 = vadd.f32 %v532_v11, %v531_v21  ;;  %v578_v20 = vadd.f32 %v577_v6, %v576_v28  ;;  %v605_v25 = vrot.slane %v604_v35, 4  ;;  %v4067_v9 = vcombine.high %v2337_v53, %v2337_v53 }
  0x8c   : > { %4064 = vst [vmem:[#allocation26_spill] sm:$0xff] %v2575_v14  ;;  %4065 = vst [vmem:[#allocation27_spill] sm:$0xff] %v2577_v12  ;;  %v2585_v41 = vadd.f32 %v539_v45, %v538_v57  ;;  %v2587_v0 = vadd.f32 %v546_v30, %v545_v32  ;;  %v2589_v31 = vadd.f32 %v553_v36, %v552_v1  ;;  %v565_v33 = vrot.slane %v564_v47, 2 }
  0x8d   : > { %4066 = vst [vmem:[#allocation28_spill] sm:$0xff] %v2579_v52  ;;  %v611_v3 = vsel %vm337_vm0, %v4067_v9, 0.0  ;;  %v2591_v4 = vadd.f32 %v560_v13, %v559_v42  ;;  %v572_v34 = vrot.slane %v571_v50, 2  ;;  %v585_v18 = vadd.f32 %v584_v44, %v583_v38 }
  0x8e   : > { %4068 = vst [vmem:[#allocation29_spill] sm:$0xff] %v2585_v41  ;;  %4069 = vst [vmem:[#allocation30_spill] sm:$0xff] %v2587_v0  ;;  %v618_v21 = vsel %vm337_vm0, %v2339_v54, 0.0  ;;  %v592_v28 = vadd.f32 %v591_v24, %v590_v5  ;;  %v599_v56 = vadd.f32 %v598_v7, %v597_v39  ;;  %v612_v40 = vrot.slane %v611_v3, 4 }
  0x8f   : > { %4070 = vst [vmem:[#allocation31_spill] sm:$0xff] %v2589_v31  ;;  %4071 = vst [vmem:[#allocation32_spill] sm:$0xff] %v2591_v4  ;;  %v4072_v53 = vcombine.high %v2339_v54, %v2339_v54  ;;  %v579_v32 = vrot.slane %v578_v20, 2  ;;  %v606_v46 = vadd.f32 %v605_v25, %v604_v35  ;;  %v632_v1 = vsel %vm337_vm0, %v2345_v58, 0.0 }
  0x90   : > { %v4073_v42 = vcombine.high %v2345_v58, %v2345_v58  ;;  %v619_v61 = vrot.slane %v618_v21, 4  ;;  %v646_v11 = vsel %vm337_vm0, %v2347_v59, 0.0  ;;  %v4074_v51 = vcombine.high %v2347_v59, %v2347_v59 }
  0x91   : > { %v625_v57 = vsel %vm337_vm0, %v4072_v53, 0.0  ;;  %v660_v38 = vsel %vm337_vm0, %v2349_v60, 0.0  ;;  %v566_v45 = vadd.f32 %v565_v33, %v564_v47  ;;  %v573_v6 = vadd.f32 %v572_v34, %v571_v50 }
  0x92   : > { %v639_v55 = vsel %vm337_vm0, %v4073_v42, 0.0  ;;  %v653_v54 = vsel %vm337_vm0, %v4074_v51, 0.0  ;;  %v586_v5 = vrot.slane %v585_v18, 2  ;;  %v626_v27 = vrot.slane %v625_v57, 4 }
  0x93   : > { %v593_v39 = vrot.slane %v592_v28, 2  ;;  %v633_v58 = vrot.slane %v632_v1, 4  ;;  %v640_v30 = vrot.slane %v639_v55, 4  ;;  %v4075_v36 = vcombine.high %v2349_v60, %v2349_v60 }
  0x94   : > { %v600_v35 = vrot.slane %v599_v56, 2  ;;  %v647_v44 = vrot.slane %v646_v11, 4  ;;  %v654_v59 = vrot.slane %v653_v54, 4  ;;  %v661_v24 = vrot.slane %v660_v38, 4 }
  0x95   : > { %v667_v13 = vsel %vm337_vm0, %v4075_v36, 0.0  ;;  %v580_v7 = vadd.f32 %v579_v32, %v578_v20  ;;  %v607_v25 = vrot.slane %v606_v46, 2  ;;  %v613_v9 = vadd.f32 %v612_v40, %v611_v3 }
  0x96   : > { %v620_v53 = vadd.f32 %v619_v61, %v618_v21  ;;  %v567_v47 = vrot.slane %v566_v45, 1  ;;  %v574_v50 = vrot.slane %v573_v6, 1  ;;  %v627_v33 = vadd.f32 %v626_v27, %v625_v57 }
  0x97   : > { %v668_v34 = vrot.slane %v667_v13, 4  ;;  %v587_v42 = vadd.f32 %v586_v5, %v585_v18  ;;  %v594_v51 = vadd.f32 %v593_v39, %v592_v28  ;;  %v634_v4 = vadd.f32 %v633_v58, %v632_v1 }
  0x98   : > { %v641_v31 = vadd.f32 %v640_v30, %v639_v55  ;;  %v601_v0 = vadd.f32 %v600_v35, %v599_v56  ;;  %v648_v60 = vadd.f32 %v647_v44, %v646_v11  ;;  %v655_v41 = vadd.f32 %v654_v59, %v653_v54 }
  0x99   : > { %v662_v36 = vadd.f32 %v661_v24, %v660_v38  ;;  %v581_v52 = vrot.slane %v580_v7, 1  ;;  %v608_v12 = vadd.f32 %v607_v25, %v606_v46  ;;  %v614_v14 = vrot.slane %v613_v9, 2 }
  0x9a   : > { %v621_v17 = vrot.slane %v620_v53, 2  ;;  %v2617_v20 = vadd.f32 %v567_v47, %v566_v45  ;;  %v2619_v3 = vadd.f32 %v574_v50, %v573_v6  ;;  %v628_v21 = vrot.slane %v627_v33, 2  ;;  %v4082_v47 = vld [vmem:[#allocation9_spill] sm:$0xff] }
  0x9b   : > { %v669_v40 = vadd.f32 %v668_v34, %v667_v13  ;;  %v588_v57 = vrot.slane %v587_v42, 1  ;;  %v595_v32 = vrot.slane %v594_v51, 1  ;;  %v635_v18 = vrot.slane %v634_v4, 2 }
  0x9c   : > { %v642_v28 = vrot.slane %v641_v31, 2  ;;  %v602_v1 = vrot.slane %v601_v0, 1  ;;  %v649_v55 = vrot.slane %v648_v60, 2  ;;  %v656_v56 = vrot.slane %v655_v41, 2 }
  0x9d   : > { %v663_v61 = vrot.slane %v662_v36, 2  ;;  %v2621_v11 = vadd.f32 %v581_v52, %v580_v7  ;;  %v609_v54 = vrot.slane %v608_v12, 1  ;;  %v615_v46 = vadd.f32 %v614_v14, %v613_v9 }
  0x9e   : > { %v622_v38 = vadd.f32 %v621_v17, %v620_v53  ;;  %v629_v5 = vadd.f32 %v628_v21, %v627_v33  ;;  %v670_v45 = vrot.slane %v669_v40, 2  ;;  %v674_v6 = vsel %vm337_vm0, %v2353_v62, 0.0 }
  0x9f   : > { %4076 = vst [vmem:[#allocation33_spill] sm:$0xff] %v2621_v11  ;;  %v4077_v27 = vcombine.high %v2353_v62, %v2353_v62  ;;  %v2629_v58 = vadd.f32 %v588_v57, %v587_v42  ;;  %v2631_v30 = vadd.f32 %v595_v32, %v594_v51  ;;  %v636_v13 = vadd.f32 %v635_v18, %v634_v4 }
  0xa0   : > { %v643_v52 = vadd.f32 %v642_v28, %v641_v31  ;;  %v2633_v35 = vadd.f32 %v602_v1, %v601_v0  ;;  %v650_v14 = vadd.f32 %v649_v55, %v648_v60  ;;  %v657_v17 = vadd.f32 %v656_v56, %v655_v41  ;;  %v4084_v41 = vld [vmem:[#allocation10_spill] sm:$0xff] }
  0xa1   : > { %v681_v39 = vsel %vm337_vm0, %v4077_v27, 0.0  ;;  %4078 = vst [vmem:[#allocation34_spill] sm:$0xff] %v2629_v58  ;;  %4079 = vst [vmem:[#allocation35_spill] sm:$0xff] %v2631_v30  ;;  %v664_v44 = vadd.f32 %v663_v61, %v662_v36  ;;  %v2635_v59 = vadd.f32 %v609_v54, %v608_v12  ;;  %v616_v24 = vrot.slane %v615_v46, 1 }
  0xa2   : > { %4080 = vst [vmem:[#allocation36_spill] sm:$0xff] %v2633_v35  ;;  %v675_v7 = vrot.slane %v674_v6, 4  ;;  %v682_v25 = vrot.slane %v681_v39, 4  ;;  %v623_v9 = vrot.slane %v622_v38, 1  ;;  %v630_v62 = vrot.slane %v629_v5, 1 }
  0xa3   : > { %4081 = vst [vmem:[#allocation37_spill] sm:$0xff] %v2635_v59  ;;  %v671_v53 = vadd.f32 %v670_v45, %v669_v40  ;;  %v688_v50 = vsel %vm337_vm0, %v4082_v47, 0.0  ;;  %v637_v33 = vrot.slane %v636_v13, 1  ;;  %v644_v34 = vrot.slane %v643_v52, 1 }
  0xa4   : > { %v4083_v0 = vcombine.high %v4082_v47, %v4082_v47  ;;  %v702_v12 = vsel %vm337_vm0, %v4084_v41, 0.0  ;;  %v651_v4 = vrot.slane %v650_v14, 1  ;;  %v658_v42 = vrot.slane %v657_v17, 1 }
  0xa5   : > { %v665_v51 = vrot.slane %v664_v44, 1  ;;  %v4085_v60 = vcombine.high %v4084_v41, %v4084_v41  ;;  %v2649_v21 = vadd.f32 %v616_v24, %v615_v46  ;;  %v676_v40 = vadd.f32 %v675_v7, %v674_v6  ;;  %v4094_v6 = vld [vmem:[#allocation11_spill] sm:$0xff] }
  0xa6   : > { %v695_v31 = vsel %vm337_vm0, %v4083_v0, 0.0  ;;  %v683_v57 = vadd.f32 %v682_v25, %v681_v39  ;;  %v689_v32 = vrot.slane %v688_v50, 4  ;;  %v2651_v18 = vadd.f32 %v623_v9, %v622_v38  ;;  %v4097_v9 = vld [vmem:[#allocation12_spill] sm:$0xff] }
  0xa7   : > { %v709_v36 = vsel %vm337_vm0, %v4085_v60, 0.0  ;;  %4086 = vst [vmem:[#allocation9_spill] sm:$0xff] %v2649_v21  ;;  %v672_v28 = vrot.slane %v671_v53, 1  ;;  %v696_v1 = vrot.slane %v695_v31, 4  ;;  %v703_v55 = vrot.slane %v702_v12, 4 }
  0xa8   : > { %4087 = vst [vmem:[#allocation10_spill] sm:$0xff] %v2651_v18  ;;  %v2653_v56 = vadd.f32 %v630_v62, %v629_v5  ;;  %v2655_v61 = vadd.f32 %v637_v33, %v636_v13  ;;  %v2657_v54 = vadd.f32 %v644_v34, %v643_v52  ;;  %v710_v45 = vrot.slane %v709_v36, 4 }
  0xa9   : > { %v2659_v27 = vadd.f32 %v651_v4, %v650_v14  ;;  %v2661_v47 = vadd.f32 %v658_v42, %v657_v17  ;;  %v2663_v46 = vadd.f32 %v665_v51, %v664_v44  ;;  %v716_v38 = vsel %vm337_vm0, %v4094_v6, 0.0 }
  0xaa   : > { %4088 = vst [vmem:[#allocation38_spill] sm:$0xff] %v2653_v56  ;;  %4089 = vst [vmem:[#allocation39_spill] sm:$0xff] %v2655_v61  ;;  %v677_v39 = vrot.slane %v676_v40, 2  ;;  %v684_v24 = vrot.slane %v683_v57, 2  ;;  %v690_v7 = vadd.f32 %v689_v32, %v688_v50  ;;  %v4095_v5 = vcombine.high %v4094_v6, %v4094_v6  ;;  %v4099_v50 = vld [vmem:[#allocation13_spill] sm:$0xff] }
  0xab   : > { %4090 = vst [vmem:[#allocation40_spill] sm:$0xff] %v2657_v54  ;;  %4091 = vst [vmem:[#allocation41_spill] sm:$0xff] %v2659_v27  ;;  %v2671_v52 = vadd.f32 %v672_v28, %v671_v53  ;;  %v697_v25 = vadd.f32 %v696_v1, %v695_v31  ;;  %v704_v14 = vadd.f32 %v703_v55, %v702_v12  ;;  %v730_v17 = vsel %vm337_vm0, %v4097_v9, 0.0  ;;  %v4101_v12 = vld [vmem:[#allocation14_spill] sm:$0xff] }
  0xac   : > { %4092 = vst [vmem:[#allocation42_spill] sm:$0xff] %v2661_v47  ;;  %4093 = vst [vmem:[#allocation43_spill] sm:$0xff] %v2663_v46  ;;  %v723_v13 = vsel %vm337_vm0, %v4095_v5, 0.0  ;;  %v711_v44 = vadd.f32 %v710_v45, %v709_v36  ;;  %v717_v62 = vrot.slane %v716_v38, 4  ;;  %v4098_v33 = vcombine.high %v4097_v9, %v4097_v9  ;;  %v4103_v45 = vld [vmem:[#allocation15_spill] sm:$0xff] }
  0xad   : > { %4096 = vst [vmem:[#allocation11_spill] sm:$0xff] %v2671_v52  ;;  %v744_v0 = vsel %vm337_vm0, %v4099_v50, 0.0  ;;  %v724_v41 = vrot.slane %v723_v13, 4  ;;  %v4100_v53 = vcombine.high %v4099_v50, %v4099_v50  ;;  %v758_v4 = vsel %vm337_vm0, %v4101_v12, 0.0 }
  0xae   : > { %v737_v34 = vsel %vm337_vm0, %v4098_v33, 0.0  ;;  %v4102_v42 = vcombine.high %v4101_v12, %v4101_v12  ;;  %v678_v60 = vadd.f32 %v677_v39, %v676_v40  ;;  %v685_v36 = vadd.f32 %v684_v24, %v683_v57 }
  0xaf   : > { %v751_v31 = vsel %vm337_vm0, %v4100_v53, 0.0  ;;  %v691_v32 = vrot.slane %v690_v7, 2  ;;  %v731_v28 = vrot.slane %v730_v17, 4  ;;  %v738_v1 = vrot.slane %v737_v34, 4 }
  0xb0   : > { %v765_v51 = vsel %vm337_vm0, %v4102_v42, 0.0  ;;  %v745_v55 = vrot.slane %v744_v0, 4  ;;  %v772_v6 = vsel %vm337_vm0, %v4103_v45, 0.0  ;;  %v4104_v5 = vcombine.high %v4103_v45, %v4103_v45 }
  0xb1   : > { %v698_v33 = vrot.slane %v697_v25, 2  ;;  %v752_v50 = vrot.slane %v751_v31, 4  ;;  %v759_v53 = vrot.slane %v758_v4, 4  ;;  %v766_v12 = vrot.slane %v765_v51, 4 }
  0xb2   : > { %v779_v9 = vsel %vm337_vm0, %v4104_v5, 0.0  ;;  %v705_v52 = vrot.slane %v704_v14, 2  ;;  %v712_v42 = vrot.slane %v711_v44, 2  ;;  %v718_v40 = vadd.f32 %v717_v62, %v716_v38 }
  0xb3   : > { %v725_v57 = vadd.f32 %v724_v41, %v723_v13  ;;  %v679_v39 = vrot.slane %v678_v60, 1  ;;  %v732_v24 = vadd.f32 %v731_v28, %v730_v17  ;;  %v773_v46 = vrot.slane %v772_v6, 4 }
  0xb4   : > { %v780_v47 = vrot.slane %v779_v9, 4  ;;  %v686_v27 = vrot.slane %v685_v36, 1  ;;  %v692_v54 = vadd.f32 %v691_v32, %v690_v7  ;;  %v739_v61 = vadd.f32 %v738_v1, %v737_v34 }
  0xb5   : > { %v746_v56 = vadd.f32 %v745_v55, %v744_v0  ;;  %v699_v18 = vadd.f32 %v698_v33, %v697_v25  ;;  %v753_v45 = vadd.f32 %v752_v50, %v751_v31  ;;  %v760_v21 = vadd.f32 %v759_v53, %v758_v4 }
  0xb6   : > { %v767_v5 = vadd.f32 %v766_v12, %v765_v51  ;;  %v706_v59 = vadd.f32 %v705_v52, %v704_v14  ;;  %v713_v35 = vadd.f32 %v712_v42, %v711_v44  ;;  %v719_v30 = vrot.slane %v718_v40, 2 }
  0xb7   : > { %v726_v58 = vrot.slane %v725_v57, 2  ;;  %v2697_v11 = vadd.f32 %v679_v39, %v678_v60  ;;  %v733_v38 = vrot.slane %v732_v24, 2  ;;  %v774_v13 = vadd.f32 %v773_v46, %v772_v6  ;;  %v4105_v39 = vld [vmem:[#allocation16_spill] sm:$0xff] }
  0xb8   : > { %v781_v62 = vadd.f32 %v780_v47, %v779_v9  ;;  %v2699_v17 = vadd.f32 %v686_v27, %v685_v36  ;;  %v693_v41 = vrot.slane %v692_v54, 1  ;;  %v740_v28 = vrot.slane %v739_v61, 2 }
  0xb9   : > { %v747_v7 = vrot.slane %v746_v56, 2  ;;  %v700_v34 = vrot.slane %v699_v18, 1  ;;  %v754_v0 = vrot.slane %v753_v45, 2  ;;  %v761_v25 = vrot.slane %v760_v21, 2 }
  0xba   : > { %v768_v31 = vrot.slane %v767_v5, 2  ;;  %v707_v4 = vrot.slane %v706_v59, 1  ;;  %v720_v51 = vadd.f32 %v719_v30, %v718_v40  ;;  %v727_v52 = vadd.f32 %v726_v58, %v725_v57 }
  0xbb   : > { %1925 = vrsqrt.f32 %v2457_v23  ;;  %v734_v14 = vadd.f32 %v733_v38, %v732_v24  ;;  %v775_v44 = vrot.slane %v774_v13, 2  ;;  %v782_v60 = vrot.slane %v781_v62, 2 }
  0xbc   : > { %1927 = vrsqrt.f32 %v2459_v63  ;;  %v714_v47 = vrot.slane %v713_v35, 1  ;;  %v741_v27 = vadd.f32 %v740_v28, %v739_v61  ;;  %v748_v46 = vadd.f32 %v747_v7, %v746_v56  ;;  %v4108_v28 = vld [vmem:[#allocation19_spill] sm:$0xff] }
  0xbd   : > { %1929 = vrsqrt.f32 %v2461_v43  ;;  %v755_v36 = vadd.f32 %v754_v0, %v753_v45  ;;  %v762_v32 = vadd.f32 %v761_v25, %v760_v21  ;;  %v769_v1 = vadd.f32 %v768_v31, %v767_v5  ;;  %v4106_v45 = vld [vmem:[#allocation17_spill] sm:$0xff] }
  0xbe   : > { %1931 = vrsqrt.f32 %v2463_v10  ;;  %v2705_v55 = vadd.f32 %v693_v41, %v692_v54  ;;  %v721_v58 = vrot.slane %v720_v51, 1  ;;  %v728_v30 = vrot.slane %v727_v52, 1 }
  0xbf   : > { %1933 = vrsqrt.f32 %v2465_v19  ;;  %v735_v6 = vrot.slane %v734_v14, 1  ;;  %v776_v9 = vadd.f32 %v775_v44, %v774_v13  ;;  %v783_v33 = vadd.f32 %v782_v60, %v781_v62  ;;  %v4111_v44 = vld [vmem:[#allocation22_spill] sm:$0xff] }
  0xc0   : > { %1935 = vrsqrt.f32 %v2469_v37  ;;  %v2709_v61 = vadd.f32 %v700_v34, %v699_v18  ;;  %v2711_v56 = vadd.f32 %v707_v4, %v706_v59  ;;  %v742_v50 = vrot.slane %v741_v27, 1  ;;  %v4109_v34 = vld [vmem:[#allocation20_spill] sm:$0xff] }
  0xc1   : > { %v749_v21 = vrot.slane %v748_v46, 1  ;;  %v756_v53 = vrot.slane %v755_v36, 1  ;;  %v763_v12 = vrot.slane %v762_v32, 1  ;;  %v770_v42 = vrot.slane %v769_v1, 1 }
  0xc2   : > { %1937 = vrsqrt.f32 %v2471_v29  ;;  %v2714_v54 = vadd.f32 %v714_v47, %v713_v35  ;;  %v2716_v40 = vadd.f32 %v721_v58, %v720_v51  ;;  %v2718_v57 = vadd.f32 %v728_v30, %v727_v52  ;;  %v4107_v35 = vld [vmem:[#allocation18_spill] sm:$0xff]  ;;  %v4110_v51 = vld [vmem:[#allocation21_spill] sm:$0xff] }
  0xc3   : > { %1939 = vrsqrt.f32 %v4105_v39  ;;  %v2721_v24 = vadd.f32 %v735_v6, %v734_v14  ;;  %v777_v18 = vrot.slane %v776_v9, 1  ;;  %v784_v59 = vrot.slane %v783_v33, 1 }
  0xc4   : > { %1941 = vrsqrt.f32 %v4106_v45  ;;  %v2724_v5 = vadd.f32 %v742_v50, %v741_v27  ;;  %v2726_v38 = vadd.f32 %v749_v21, %v748_v46  ;;  %vm788_vm1 = vcmp.eq.f32.partialorder %v2457_v23, inf  ;;  %v4112_v27 = vld [vmem:[#allocation23_spill] sm:$0xff] }
  0xc5   : > { %1943 = vrsqrt.f32 %v4107_v35  ;;  %v2730_v13 = vadd.f32 %v756_v53, %v755_v36  ;;  %v2732_v62 = vadd.f32 %v763_v12, %v762_v32  ;;  %v2734_v41 = vadd.f32 %v770_v42, %v769_v1  ;;  %v4113_v1 = vld [vmem:[#allocation24_spill] sm:$0xff] }
  0xc6   : > { %1945 = vrsqrt.f32 %v4108_v28  ;;  %vm790_vm2 = vcmp.eq.f32.partialorder %v2457_v23, 0.0  ;;  %v791_v7 = vand.u32 2147483648, %v2457_v23  ;;  %vm795_vm3 = vcmp.eq.f32.partialorder %v2459_v63, inf }
  0xc7   : > { %1947 = vrsqrt.f32 %v4109_v34  ;;  %v2741_v25 = vadd.f32 %v777_v18, %v776_v9  ;;  %v2743_v31 = vadd.f32 %v784_v59, %v783_v33  ;;  %v798_v4 = vand.u32 2147483648, %v2459_v63 }
  0xc8   : > { %v1926_v0 = vpop.eup %1925  ;;  %1949 = vrsqrt.f32 %v4110_v51  ;;  %vm797_vm4 = vcmp.eq.f32.partialorder %v2459_v63, 0.0  ;;  %vm802_vm5 = vcmp.eq.f32.partialorder %v2461_v43, inf  ;;  %v805_v14 = vand.u32 2147483648, %v2461_v43 }
  0xc9   : > { %v1928_v52 = vpop.eup %1927  ;;  %vm809_vm6 = vcmp.eq.f32.partialorder %v2463_v10, inf  ;;  %1951 = vrsqrt.f32 %v4111_v44  ;;  %vm804_vm7 = vcmp.eq.f32.partialorder %v2461_v43, 0.0  ;;  %vm811_vm8 = vcmp.eq.f32.partialorder %v2463_v10, 0.0 }
  0xca   : > { %v1930_v60 = vpop.eup %1929  ;;  %v812_v47 = vand.u32 2147483648, %v2463_v10  ;;  %vm816_vm9 = vcmp.eq.f32.partialorder %v2465_v19, inf  ;;  %1953 = vrsqrt.f32 %v4112_v27  ;;  %v787_v36 = vmul.f32 %v1926_v0, %v2457_v23 }
  0xcb   : > { %v1932_v46 = vpop.eup %1931  ;;  %vm818_vm10 = vcmp.eq.f32.partialorder %v2465_v19, 0.0  ;;  %v819_v32 = vand.u32 2147483648, %v2465_v19  ;;  %vm823_vm11 = vcmp.eq.f32.partialorder %v2469_v37, inf  ;;  %1955 = vrsqrt.f32 %v4113_v1 }
  0xcc   : > { %v1934_v58 = vpop.eup %1933  ;;  %v826_v30 = vand.u32 2147483648, %v2469_v37  ;;  %vm830_vm13 = vcmp.eq.f32.partialorder %v2471_v29, inf  ;;  %v833_v6 = vand.u32 2147483648, %v2471_v29  ;;  %v794_v33 = vmul.f32 %v1928_v52, %v2459_v63 }
  0xcd   : > { %v1936_v9 = vpop.eup %1935  ;;  %1957 = vrsqrt.f32 %v2537_v8  ;;  %v801_v21 = vmul.f32 %v1930_v60, %v2461_v43  ;;  %v808_v53 = vmul.f32 %v1932_v46, %v2463_v10  ;;  %v789_v18 = vsel %vm788_vm1, %v2457_v23, %v787_v36 }
  0xce   : > { %v815_v59 = vmul.f32 %v1934_v58, %v2465_v19  ;;  %vm839_vm15 = vcmp.eq.f32.partialorder %v4105_v39, 0.0  ;;  %v822_v60 = vmul.f32 %v1936_v9, %v2469_v37  ;;  %vm846_vm0 = vcmp.eq.f32.partialorder %v4106_v45, 0.0 }
  0xcf   : > { %v1938_v42 = vpop.eup %1937  ;;  %vm865_vm12 = vcmp.eq.f32.partialorder %v4109_v34, inf  ;;  %v796_v58 = vsel %vm795_vm3, %v2459_v63, %v794_v33  ;;  %vm853_vm1 = vcmp.eq.f32.partialorder %v4107_v35, 0.0  ;;  %1959 = vrsqrt.f32 %v2539_v16 }
  0xd0   : > { %v1940_v52 = vpop.eup %1939  ;;  %v2800_v12 = vsel %vm790_vm2, %v791_v7, %v789_v18  ;;  %v803_v33 = vsel %vm802_vm5, %v2461_v43, %v801_v21  ;;  %v810_v50 = vsel %vm809_vm6, %v2463_v10, %v808_v53  ;;  %v829_v0 = vmul.f32 %v1938_v42, %v2471_v29 }
  0xd1   : > { %v1942_v36 = vpop.eup %1941  ;;  %vm860_vm3 = vcmp.eq.f32.partialorder %v4108_v28, 0.0  ;;  %vm879_vm14 = vcmp.eq.f32.partialorder %v4111_v44, inf  ;;  %v817_v23 = vsel %vm816_vm9, %v2465_v19, %v815_v59  ;;  %v836_v7 = vmul.f32 %v1940_v52, %v4105_v39 }
  0xd2   : > { %v1944_v46 = vpop.eup %1943  ;;  %vm867_vm2 = vcmp.eq.f32.partialorder %v4109_v34, 0.0  ;;  %vm886_vm5 = vcmp.eq.f32.partialorder %v4112_v27, inf  ;;  %1961 = vrsqrt.f32 %v2541_v26  ;;  %v2823_v42 = vsel %vm797_vm4, %v798_v4, %v796_v58 }
  0xd3   : > { %v1946_v9 = vpop.eup %1945  ;;  %v824_v18 = vsel %vm823_vm11, %v2469_v37, %v822_v60  ;;  %v843_v59 = vmul.f32 %v1942_v36, %v4106_v45  ;;  %vm874_vm6 = vcmp.eq.f32.partialorder %v4110_v51, 0.0  ;;  %vm893_vm9 = vcmp.eq.f32.partialorder %v4113_v1, inf }
  0xd4   : > { %v1948_v53 = vpop.eup %1947  ;;  %v2835_v21 = vsel %vm804_vm7, %v805_v14, %v803_v33  ;;  %v2841_v63 = vsel %vm811_vm8, %v812_v47, %v810_v50  ;;  %v850_v4 = vmul.f32 %v1944_v46, %v4107_v35  ;;  %vm881_vm4 = vcmp.eq.f32.partialorder %v4111_v44, 0.0 }
  0xd5   : > { %v1950_v52 = vpop.eup %1949  ;;  %v896_v60 = vand.u32 2147483648, %v4113_v1  ;;  %v2850_v43 = vsel %vm818_vm10, %v819_v32, %v817_v23  ;;  %v831_v14 = vsel %vm830_vm13, %v2471_v29, %v829_v0  ;;  %v857_v10 = vmul.f32 %v1946_v9, %v4108_v28 }
  0xd6   : > { %v1952_v36 = vpop.eup %1951  ;;  %vm888_vm7 = vcmp.eq.f32.partialorder %v4112_v27, 0.0  ;;  %1963 = vrsqrt.f32 %v2543_v2  ;;  %vm4114_vm11 = vcmp.eq.f32.partialorder %v2469_v37, 0.0  ;;  %vm4115_vm10 = vcmp.eq.f32.partialorder %v4105_v39, inf }
  0xd7   : > { %v1954_v47 = vpop.eup %1953  ;;  %v2863_v19 = vsel %vm4114_vm11, %v826_v30, %v824_v18  ;;  %v838_v32 = vsel %vm4115_vm10, %v4105_v39, %v836_v7  ;;  %v864_v50 = vmul.f32 %v1948_v53, %v4109_v34  ;;  %vm895_vm13 = vcmp.eq.f32.partialorder %v4113_v1, 0.0 }
  0xd8   : > { %1965 = vrsqrt.f32 %v2551_v15  ;;  %v1956_v0 = vpop.eup %1955  ;;  %vm4116_vm8 = vcmp.eq.f32.partialorder %v4106_v45, inf  ;;  %v871_v58 = vmul.f32 %v1950_v52, %v4110_v51  ;;  %v903_v37 = vand.u32 2147483648, %v2537_v8 }
  0xd9   : > { %v845_v46 = vsel %vm4116_vm8, %v4106_v45, %v843_v59  ;;  %1967 = vrsqrt.f32 %v2553_v49  ;;  %vm4117_vm11 = vcmp.eq.f32.partialorder %v2471_v29, 0.0  ;;  %vm4118_vm10 = vcmp.eq.f32.partialorder %v4107_v35, inf }
  0xda   : > { %v2881_v30 = vsel %vm4117_vm11, %v833_v6, %v831_v14  ;;  %v852_v9 = vsel %vm4118_vm10, %v4107_v35, %v850_v4  ;;  %v878_v33 = vmul.f32 %v1952_v36, %v4111_v44  ;;  %vm902_vm8 = vcmp.eq.f32.partialorder %v2537_v8, 0.0  ;;  %v1958_v23 = vpop.eup %1957 }
  0xdb   : > { %1969 = vrsqrt.f32 %v2555_v22  ;;  %v4119_v7 = vand.u32 2147483648, %v4105_v39  ;;  %vm4120_vm11 = vcmp.eq.f32.partialorder %v4108_v28, inf  ;;  %v885_v6 = vmul.f32 %v1954_v47, %v4112_v27 }
  0xdc   : > { %v859_v29 = vsel %vm4120_vm11, %v4108_v28, %v857_v10  ;;  %vm907_vm10 = vcmp.eq.f32.partialorder %v2539_v16, inf  ;;  %v4121_v18 = vand.u32 2147483648, %v4106_v45  ;;  %v866_v39 = vsel %vm865_vm12, %v4109_v34, %v864_v50  ;;  %v4124_v10 = vld [vmem:[#allocation25_spill] sm:$0xff] }
  0xdd   : > { %v2893_v53 = vsel %vm839_vm15, %v4119_v7, %v838_v32  ;;  %v892_v52 = vmul.f32 %v1956_v0, %v4113_v1  ;;  %1971 = vrsqrt.f32 %v2559_v48  ;;  %v4122_v4 = vand.u32 2147483648, %v4107_v35  ;;  %v4126_v0 = vld [vmem:[#allocation26_spill] sm:$0xff] }
  0xde   : > { %v2904_v59 = vsel %vm846_vm0, %v4121_v18, %v845_v46  ;;  %vm4123_vm15 = vcmp.eq.f32.partialorder %v4110_v51, inf  ;;  %v910_v14 = vand.u32 2147483648, %v2539_v16  ;;  %1973 = vrsqrt.f32 %v4124_v10  ;;  %v1960_v46 = vpop.eup %1959 }
  0xdf   : > { %v2915_v36 = vsel %vm853_vm1, %v4122_v4, %v852_v9  ;;  %v873_v45 = vsel %vm4123_vm15, %v4110_v51, %v871_v58  ;;  %v4125_v47 = vand.u32 2147483648, %v4108_v28  ;;  %v880_v35 = vsel %vm879_vm14, %v4111_v44, %v878_v33  ;;  %v4128_v33 = vld [vmem:[#allocation27_spill] sm:$0xff]  ;;  %v1962_v18 = vpop.eup %1961 }
  0xe0   : > { %v899_v50 = vmul.f32 %v1958_v23, %v2537_v8  ;;  %vm909_vm12 = vcmp.eq.f32.partialorder %v2539_v16, 0.0  ;;  %1975 = vrsqrt.f32 %v4126_v0  ;;  %v4127_v58 = vand.u32 2147483648, %v4109_v34 }
  0xe1   : > { %v2926_v32 = vsel %vm860_vm3, %v4125_v47, %v859_v29  ;;  %v887_v28 = vsel %vm886_vm5, %v4112_v27, %v885_v6  ;;  %vm914_vm0 = vcmp.eq.f32.partialorder %v2541_v26, inf  ;;  %1977 = vrsqrt.f32 %v4128_v33  ;;  %v4130_v29 = vld [vmem:[#allocation28_spill] sm:$0xff] }
  0xe2   : > { %v2938_v9 = vsel %vm867_vm2, %v4127_v58, %v866_v39  ;;  %v4129_v23 = vand.u32 2147483648, %v4110_v51  ;;  %v894_v34 = vsel %vm893_vm9, %v4113_v1, %v892_v52  ;;  %vm916_vm14 = vcmp.eq.f32.partialorder %v2541_v26, 0.0  ;;  %v4133_v51 = vld [vmem:[#allocation29_spill] sm:$0xff]  ;;  %v4139_v1 = vld [vmem:[#allocation31_spill] sm:$0xff] }
  0xe3   : > { %1979 = vrsqrt.f32 %v4130_v29  ;;  %v4131_v6 = vand.u32 2147483648, %v4111_v44  ;;  %v917_v4 = vand.u32 2147483648, %v2541_v26  ;;  %vm921_vm1 = vcmp.eq.f32.partialorder %v2543_v2, inf }
  0xe4   : > { %v2949_v7 = vsel %vm874_vm6, %v4129_v23, %v873_v45  ;;  %1981 = vrsqrt.f32 %v4133_v51  ;;  %v4134_v45 = vand.u32 2147483648, %v4112_v27  ;;  %vm4136_vm3 = vcmp.eq.f32.partialorder %v2537_v8, inf  ;;  %v1964_v23 = vpop.eup %1963 }
  0xe5   : > { %v2960_v39 = vsel %vm881_vm4, %v4131_v6, %v880_v35  ;;  %v901_v47 = vsel %vm4136_vm3, %v2537_v8, %v899_v50  ;;  %v906_v44 = vmul.f32 %v1960_v46, %v2539_v16  ;;  %v2978_v58 = vsel %vm895_vm13, %v896_v60, %v894_v34  ;;  %v1966_v60 = vpop.eup %1965 }
  0xe6   : > { %4132 = vst [vmem:[#allocation12_spill] sm:$0xff] %v2960_v39  ;;  %v2969_v52 = vsel %vm888_vm7, %v4134_v45, %v887_v28  ;;  %4137 = vst [vmem:[#allocation14_spill] sm:$0xff] %v2978_v58  ;;  %vm923_vm2 = vcmp.eq.f32.partialorder %v2543_v2, 0.0  ;;  %vm928_vm5 = vcmp.eq.f32.partialorder %v2551_v15, inf  ;;  %v4138_v28 = vld [vmem:[#allocation30_spill] sm:$0xff]  ;;  %v913_v6 = vmul.f32 %v1962_v18, %v2541_v26  ;;  %v4141_v18 = vld [vmem:[#allocation32_spill] sm:$0xff]  ;;  %v1968_v45 = vpop.eup %1967 }
  0xe7   : > { %4135 = vst [vmem:[#allocation13_spill] sm:$0xff] %v2969_v52  ;;  %1983 = vrsqrt.f32 %v4138_v28  ;;  %vm930_vm6 = vcmp.eq.f32.partialorder %v2551_v15, 0.0  ;;  %vm935_vm9 = vcmp.eq.f32.partialorder %v2553_v49, inf  ;;  %v2991_v46 = vsel %vm902_vm8, %v903_v37, %v901_v47 }
  0xe8   : > { %1985 = vrsqrt.f32 %v4139_v1  ;;  %4140 = vst [vmem:[#allocation15_spill] sm:$0xff] %v2991_v46  ;;  %vm937_vm4 = vcmp.eq.f32.partialorder %v2553_v49, 0.0  ;;  %vm942_vm7 = vcmp.eq.f32.partialorder %v2555_v22, inf  ;;  %v908_v50 = vsel %vm907_vm10, %v2539_v16, %v906_v44  ;;  %v1970_v37 = vpop.eup %1969 }
  0xe9   : > { %1987 = vrsqrt.f32 %v4141_v18  ;;  %vm944_vm13 = vcmp.eq.f32.partialorder %v2555_v22, 0.0  ;;  %vm949_vm11 = vcmp.eq.f32.partialorder %v2559_v48, inf  ;;  %vm956_vm8 = vcmp.eq.f32.partialorder %v4124_v10, inf }
  0xea   : > { %v920_v47 = vmul.f32 %v1964_v23, %v2543_v2  ;;  %1989 = vrsqrt.f32 %v2617_v20  ;;  %v915_v44 = vsel %vm914_vm0, %v2541_v26, %v913_v6  ;;  %v927_v27 = vmul.f32 %v1966_v60, %v2551_v15  ;;  %v1972_v35 = vpop.eup %1971  ;;  %v4143_v6 = vld [vmem:[#allocation33_spill] sm:$0xff] }
  0xeb   : > { %1991 = vrsqrt.f32 %v2619_v3  ;;  %v3017_v23 = vsel %vm909_vm12, %v910_v14, %v908_v50  ;;  %v934_v34 = vmul.f32 %v1968_v45, %v2553_v49  ;;  %vm970_vm15 = vcmp.eq.f32.partialorder %v4128_v33, inf  ;;  %v1974_v60 = vpop.eup %1973 }
  0xec   : > { %4142 = vst [vmem:[#allocation16_spill] sm:$0xff] %v3017_v23  ;;  %1993 = vrsqrt.f32 %v4143_v6  ;;  %v941_v46 = vmul.f32 %v1970_v37, %v2555_v22  ;;  %vm977_vm10 = vcmp.eq.f32.partialorder %v4130_v29, inf  ;;  %v3030_v50 = vsel %vm916_vm14, %v917_v4, %v915_v44  ;;  %v4145_v4 = vld [vmem:[#allocation34_spill] sm:$0xff] }
  0xed   : > { %v1976_v14 = vpop.eup %1975  ;;  %4144 = vst [vmem:[#allocation17_spill] sm:$0xff] %v3030_v50  ;;  %v922_v45 = vsel %vm921_vm1, %v2543_v2, %v920_v47  ;;  %vm972_vm12 = vcmp.eq.f32.partialorder %v4128_v33, 0.0  ;;  %vm984_vm3 = vcmp.eq.f32.partialorder %v4133_v51, inf  ;;  %v929_v16 = vsel %vm928_vm5, %v2551_v15, %v927_v27  ;;  %v4146_v27 = vld [vmem:[#allocation35_spill] sm:$0xff] }
  0xee   : > { %v1978_v8 = vpop.eup %1977  ;;  %v948_v23 = vmul.f32 %v1972_v35, %v2559_v48  ;;  %vm979_vm14 = vcmp.eq.f32.partialorder %v4130_v29, 0.0  ;;  %vm991_vm0 = vcmp.eq.f32.partialorder %v4138_v28, inf  ;;  %1995 = vrsqrt.f32 %v4145_v4 }
  0xef   : > { %v936_v44 = vsel %vm935_vm9, %v2553_v49, %v934_v34  ;;  %v955_v37 = vmul.f32 %v1974_v60, %v4124_v10  ;;  %vm986_vm1 = vcmp.eq.f32.partialorder %v4133_v51, 0.0  ;;  %1997 = vrsqrt.f32 %v4146_v27 }
  0xf0   : > { %v1980_v47 = vpop.eup %1979  ;;  %v4147_v26 = vand.u32 2147483648, %v2543_v2  ;;  %v943_v34 = vsel %vm942_vm7, %v2555_v22, %v941_v46  ;;  %v962_v60 = vmul.f32 %v1976_v14, %v4126_v0  ;;  %vm1005_vm9 = vcmp.eq.f32.partialorder %v4141_v18, inf }
  0xf1   : > { %v1982_v50 = vpop.eup %1981  ;;  %v4149_v52 = vand.u32 2147483648, %v2551_v15  ;;  %v969_v39 = vmul.f32 %v1978_v8, %v4128_v33  ;;  %vm993_vm5 = vcmp.eq.f32.partialorder %v4138_v28, 0.0  ;;  %v4151_v46 = vand.u32 2147483648, %v2553_v49  ;;  %v4153_v8 = vld [vmem:[#allocation36_spill] sm:$0xff] }
  0xf2   : > { %v3058_v58 = vsel %vm923_vm2, %v4147_v26, %v922_v45  ;;  %v950_v15 = vsel %vm949_vm11, %v2559_v48, %v948_v23  ;;  %vm1000_vm2 = vcmp.eq.f32.partialorder %v4139_v1, 0.0  ;;  %1999 = vrsqrt.f32 %v4153_v8 }
  0xf3   : > { %4148 = vst [vmem:[#allocation18_spill] sm:$0xff] %v3058_v58  ;;  %v3069_v35 = vsel %vm930_vm6, %v4149_v52, %v929_v16  ;;  %v3079_v14 = vsel %vm937_vm4, %v4151_v46, %v936_v44  ;;  %v976_v52 = vmul.f32 %v1980_v47, %v4130_v29  ;;  %vm1012_vm6 = vcmp.eq.f32.partialorder %v2617_v20, inf  ;;  %v4156_v47 = vld [vmem:[#allocation37_spill] sm:$0xff] }
  0xf4   : > { %4150 = vst [vmem:[#allocation19_spill] sm:$0xff] %v3069_v35  ;;  %v1984_v26 = vpop.eup %1983  ;;  %4152 = vst [vmem:[#allocation20_spill] sm:$0xff] %v3079_v14  ;;  %v4154_v45 = vand.u32 2147483648, %v2555_v22  ;;  %v957_v44 = vsel %vm956_vm8, %v4124_v10, %v955_v37  ;;  %v983_v23 = vmul.f32 %v1982_v50, %v4133_v51  ;;  %vm1007_vm4 = vcmp.eq.f32.partialorder %v4141_v18, 0.0 }
  0xf5   : > { %v1986_v16 = vpop.eup %1985  ;;  %2001 = vrsqrt.f32 %v4156_v47  ;;  %vm4157_vm7 = vcmp.eq.f32.partialorder %v4126_v0, inf  ;;  %v971_v37 = vsel %vm970_vm15, %v4128_v33, %v969_v39  ;;  %vm1014_vm8 = vcmp.eq.f32.partialorder %v2617_v20, 0.0  ;;  %v4165_v39 = vld [vmem:[#allocation10_spill] sm:$0xff] }
  0xf6   : > { %v3092_v49 = vsel %vm944_vm13, %v4154_v45, %v943_v34  ;;  %v1988_v46 = vpop.eup %1987  ;;  %v964_v2 = vsel %vm4157_vm7, %v4126_v0, %v962_v60  ;;  %v4158_v34 = vld [vmem:[#allocation9_spill] sm:$0xff]  ;;  %v4159_v45 = vand.u32 2147483648, %v2559_v48  ;;  %vm4160_vm13 = vcmp.eq.f32.partialorder %v2559_v48, 0.0 }
  0xf7   : > { %4155 = vst [vmem:[#allocation21_spill] sm:$0xff] %v3092_v49  ;;  %2003 = vrsqrt.f32 %v4158_v34  ;;  %v990_v49 = vmul.f32 %v1984_v26, %v4138_v28  ;;  %vm1026_vm7 = vcmp.eq.f32.partialorder %v4143_v6, inf  ;;  %v1990_v60 = vpop.eup %1989  ;;  %v4162_v22 = vand.u32 2147483648, %v4124_v10 }
  0xf8   : > { %v3110_v50 = vsel %vm4160_vm13, %v4159_v45, %v950_v15  ;;  %vm4163_vm11 = vcmp.eq.f32.partialorder %v4124_v10, 0.0  ;;  %v978_v48 = vsel %vm977_vm10, %v4130_v29, %v976_v52  ;;  %v997_v15 = vmul.f32 %v1986_v16, %v4139_v1  ;;  %v1992_v26 = vpop.eup %1991 }
  0xf9   : > { %4161 = vst [vmem:[#allocation22_spill] sm:$0xff] %v3110_v50  ;;  %v3122_v14 = vsel %vm4163_vm11, %v4162_v22, %v957_v44  ;;  %vm1021_vm15 = vcmp.eq.f32.partialorder %v2619_v3, 0.0  ;;  %2005 = vrsqrt.f32 %v4165_v39  ;;  %v4166_v45 = vand.u32 2147483648, %v4126_v0  ;;  %v1994_v16 = vpop.eup %1993 }
  0xfa   : > { %4164 = vst [vmem:[#allocation23_spill] sm:$0xff] %v3122_v14  ;;  %vm4167_vm13 = vcmp.eq.f32.partialorder %v4126_v0, 0.0  ;;  %v985_v10 = vsel %vm984_vm3, %v4133_v51, %v983_v23  ;;  %v1004_v44 = vmul.f32 %v1988_v46, %v4141_v18  ;;  %vm1028_vm10 = vcmp.eq.f32.partialorder %v4143_v6, 0.0 }
  0xfb   : > { %v3134_v50 = vsel %vm4167_vm13, %v4166_v45, %v964_v2  ;;  %v1029_v52 = vand.u32 2147483648, %v4143_v6  ;;  %v4168_v22 = vand.u32 2147483648, %v4128_v33  ;;  %vm1033_vm11 = vcmp.eq.f32.partialorder %v4145_v4, inf  ;;  %v4170_v2 = vld [vmem:[#allocation38_spill] sm:$0xff] }
  0xfc   : > { %2007 = vrsqrt.f32 %v4170_v2  ;;  %v4171_v23 = vand.u32 2147483648, %v4130_v29  ;;  %v992_v45 = vsel %vm991_vm0, %v4138_v28, %v990_v49  ;;  %v1011_v33 = vmul.f32 %v1990_v60, %v2617_v20  ;;  %v1996_v49 = vpop.eup %1995 }
  0xfd   : > { %v3146_v14 = vsel %vm972_vm12, %v4168_v22, %v971_v37  ;;  %v4173_v37 = vld [vmem:[#allocation39_spill] sm:$0xff]  ;;  %v4174_v22 = vand.u32 2147483648, %v4133_v51  ;;  %vm4176_vm3 = vcmp.eq.f32.partialorder %v4139_v1, inf  ;;  %vm1035_vm12 = vcmp.eq.f32.partialorder %v4145_v4, 0.0 }
  0xfe   : > { %4169 = vst [vmem:[#allocation24_spill] sm:$0xff] %v3146_v14  ;;  %v3155_v46 = vsel %vm979_vm14, %v4171_v23, %v978_v48  ;;  %2009 = vrsqrt.f32 %v4173_v37  ;;  %v999_v29 = vsel %vm4176_vm3, %v4139_v1, %v997_v15  ;;  %v1018_v48 = vmul.f32 %v1992_v26, %v2619_v3  ;;  %v1998_v15 = vpop.eup %1997 }
  0xff   : > { %4172 = vst [vmem:[#allocation25_spill] sm:$0xff] %v3155_v46  ;;  %v3166_v0 = vsel %vm986_vm1, %v4174_v22, %v985_v10  ;;  %vm1040_vm0 = vcmp.eq.f32.partialorder %v4146_v27, inf  ;;  %v1006_v60 = vsel %vm1005_vm9, %v4141_v18, %v1004_v44  ;;  %v1025_v23 = vmul.f32 %v1994_v16, %v4143_v6  ;;  %v4177_v10 = vld [vmem:[#allocation40_spill] sm:$0xff]  ;;  %v4179_v44 = vld [vmem:[#allocation41_spill] sm:$0xff] }
 0x100   : > { %4175 = vst [vmem:[#allocation26_spill] sm:$0xff] %v3166_v0  ;;  %vm1042_vm14 = vcmp.eq.f32.partialorder %v4146_v27, 0.0  ;;  %v1043_v51 = vand.u32 2147483648, %v4146_v27  ;;  %2011 = vrsqrt.f32 %v4177_v10  ;;  %v4178_v26 = vand.u32 2147483648, %v4138_v28  ;;  %v4182_v28 = vld [vmem:[#allocation42_spill] sm:$0xff] }
 0x101   : > { %vm1047_vm1 = vcmp.eq.f32.partialorder %v4153_v8, inf  ;;  %2013 = vrsqrt.f32 %v4179_v44  ;;  %v4180_v16 = vand.u32 2147483648, %v4139_v1  ;;  %v1013_v14 = vsel %vm1012_vm6, %v2617_v20, %v1011_v33 }
 0x102   : > { %v3185_v22 = vsel %vm993_vm5, %v4178_v26, %v992_v45  ;;  %vm1054_vm9 = vcmp.eq.f32.partialorder %v4156_v47, inf  ;;  %2015 = vrsqrt.f32 %v4182_v28  ;;  %v4183_v45 = vand.u32 2147483648, %v4141_v18  ;;  %v4186_v18 = vld [vmem:[#allocation43_spill] sm:$0xff] }
 0x103   : > { %v3194_v46 = vsel %vm1000_vm2, %v4180_v16, %v999_v29  ;;  %vm4185_vm5 = vcmp.eq.f32.partialorder %v2619_v3, inf  ;;  %v1032_v29 = vmul.f32 %v1996_v49, %v4145_v4  ;;  %vm1049_vm2 = vcmp.eq.f32.partialorder %v4153_v8, 0.0  ;;  %v2000_v16 = vpop.eup %1999 }
 0x104   : > { %4181 = vst [vmem:[#allocation27_spill] sm:$0xff] %v3194_v46  ;;  %v3205_v26 = vsel %vm1007_vm4, %v4183_v45, %v1006_v60  ;;  %v1020_v1 = vsel %vm4185_vm5, %v2619_v3, %v1018_v48  ;;  %v1027_v0 = vsel %vm1026_vm7, %v4143_v6, %v1025_v23  ;;  %v1039_v46 = vmul.f32 %v1998_v15, %v4146_v27  ;;  %v2002_v48 = vpop.eup %2001  ;;  %v4189_v23 = vld [vmem:[#allocation11_spill] sm:$0xff] }
 0x105   : > { %4184 = vst [vmem:[#allocation28_spill] sm:$0xff] %v3205_v26  ;;  %vm1056_vm6 = vcmp.eq.f32.partialorder %v4156_v47, 0.0  ;;  %vm1061_vm4 = vcmp.eq.f32.partialorder %v4158_v34, inf  ;;  %2017 = vrsqrt.f32 %v4186_v18  ;;  %v4187_v49 = vand.u32 2147483648, %v2617_v20  ;;  %v2004_v15 = vpop.eup %2003 }
 0x106   : > { %vm1063_vm13 = vcmp.eq.f32.partialorder %v4158_v34, 0.0  ;;  %v1064_v45 = vand.u32 2147483648, %v4158_v34  ;;  %vm1068_vm7 = vcmp.eq.f32.partialorder %v4165_v39, inf  ;;  %2019 = vrsqrt.f32 %v4189_v23 }
 0x107   : > { %v3224_v60 = vsel %vm1014_vm8, %v4187_v49, %v1013_v14  ;;  %v4190_v33 = vand.u32 2147483648, %v2619_v3  ;;  %vm1070_vm3 = vcmp.eq.f32.partialorder %v4165_v39, 0.0  ;;  %v1071_v20 = vand.u32 2147483648, %v4165_v39 }
 0x108   : > { %4188 = vst [vmem:[#allocation29_spill] sm:$0xff] %v3224_v60  ;;  %vm1075_vm8 = vcmp.eq.f32.partialorder %v4170_v2, inf  ;;  %v3242_v49 = vsel %vm1028_vm10, %v1029_v52, %v1027_v0  ;;  %v1034_v60 = vsel %vm1033_vm11, %v4145_v4, %v1032_v29  ;;  %v1046_v3 = vmul.f32 %v2000_v16, %v4153_v8 }
 0x109   : > { %v3234_v26 = vsel %vm1021_vm15, %v4190_v33, %v1020_v1  ;;  %4191 = vst [vmem:[#allocation30_spill] sm:$0xff] %v3242_v49  ;;  %vm1082_vm15 = vcmp.eq.f32.partialorder %v4173_v37, inf  ;;  %2021 = vrsqrt.f32 %v2697_v11  ;;  %v2006_v1 = vpop.eup %2005  ;;  %v1041_v33 = vsel %vm1040_vm0, %v4146_v27, %v1039_v46 }
 0x10a   : > { %v1053_v14 = vmul.f32 %v2002_v48, %v4156_v47  ;;  %vm1089_vm10 = vcmp.eq.f32.partialorder %v4177_v10, inf  ;;  %v1060_v52 = vmul.f32 %v2004_v15, %v4158_v34  ;;  %2023 = vrsqrt.f32 %v2699_v17  ;;  %v2008_v29 = vpop.eup %2007 }
 0x10b   : > { %v4192_v16 = vand.u32 2147483648, %v4145_v4  ;;  %v1067_v48 = vmul.f32 %v2006_v1, %v4165_v39  ;;  %2025 = vrsqrt.f32 %v2705_v55  ;;  %v2010_v0 = vpop.eup %2009  ;;  %v3273_v6 = vsel %vm1042_vm14, %v1043_v51, %v1041_v33 }
 0x10c   : > { %v1048_v49 = vsel %vm1047_vm1, %v4153_v8, %v1046_v3  ;;  %vm1103_vm5 = vcmp.eq.f32.partialorder %v4182_v28, inf  ;;  %vm1098_vm0 = vcmp.eq.f32.partialorder %v4179_v44, 0.0  ;;  %vm1105_vm11 = vcmp.eq.f32.partialorder %v4182_v28, 0.0 }
 0x10d   : > { %v3265_v46 = vsel %vm1035_vm12, %v4192_v16, %v1034_v60  ;;  %vm1091_vm12 = vcmp.eq.f32.partialorder %v4177_v10, 0.0  ;;  %v1055_v60 = vsel %vm1054_vm9, %v4156_v47, %v1053_v14  ;;  %vm1110_vm14 = vcmp.eq.f32.partialorder %v4186_v18, inf  ;;  %v2012_v51 = vpop.eup %2011 }
 0x10e   : > { %2027 = vrsqrt.f32 %v2709_v61  ;;  %v1062_v3 = vsel %vm1061_vm4, %v4158_v34, %v1060_v52  ;;  %v1074_v1 = vmul.f32 %v2008_v29, %v4170_v2  ;;  %vm1117_vm1 = vcmp.eq.f32.partialorder %v4189_v23, inf  ;;  %v2014_v33 = vpop.eup %2013 }
 0x10f   : > { %v4193_v16 = vand.u32 2147483648, %v4153_v8  ;;  %v1069_v27 = vsel %vm1068_vm7, %v4165_v39, %v1067_v48  ;;  %v1081_v15 = vmul.f32 %v2010_v0, %v4173_v37  ;;  %vm1112_vm9 = vcmp.eq.f32.partialorder %v4186_v18, 0.0  ;;  %v2016_v52 = vpop.eup %2015 }
 0x110   : > { %2029 = vrsqrt.f32 %v2711_v56  ;;  %v4194_v29 = vand.u32 2147483648, %v4156_v47  ;;  %v1088_v8 = vmul.f32 %v2012_v51, %v4177_v10  ;;  %vm1124_vm4 = vcmp.eq.f32.partialorder %v2697_v11, inf }
 0x111   : > { %v3299_v4 = vsel %vm1049_vm2, %v4193_v16, %v1048_v49  ;;  %vm1119_vm2 = vcmp.eq.f32.partialorder %v4189_v23, 0.0  ;;  %v1127_v49 = vand.u32 2147483648, %v2697_v11  ;;  %v3319_v0 = vsel %vm1063_vm13, %v1064_v45, %v1062_v3 }
 0x112   : > { %v3311_v14 = vsel %vm1056_vm6, %v4194_v29, %v1055_v60  ;;  %v1095_v48 = vmul.f32 %v2014_v33, %v4179_v44  ;;  %v1102_v16 = vmul.f32 %v2016_v52, %v4182_v28  ;;  %vm1126_vm7 = vcmp.eq.f32.partialorder %v2697_v11, 0.0  ;;  %v2018_v47 = vpop.eup %2017 }
 0x113   : > { %2031 = vrsqrt.f32 %v2714_v54  ;;  %v3327_v60 = vsel %vm1070_vm3, %v1071_v20, %v1069_v27  ;;  %v1076_v51 = vsel %vm1075_vm8, %v4170_v2, %v1074_v1  ;;  %vm1131_vm6 = vcmp.eq.f32.partialorder %v2699_v17, inf  ;;  %v2020_v45 = vpop.eup %2019 }
 0x114   : > { %v1134_v34 = vand.u32 2147483648, %v2699_v17  ;;  %v1083_v3 = vsel %vm1082_vm15, %v4173_v37, %v1081_v15  ;;  %v1109_v33 = vmul.f32 %v2018_v47, %v4186_v18  ;;  %v1141_v39 = vand.u32 2147483648, %v2705_v55 }
 0x115   : > { %v1090_v20 = vsel %vm1089_vm10, %v4177_v10, %v1088_v8  ;;  %v1116_v27 = vmul.f32 %v2020_v45, %v4189_v23  ;;  %2033 = vrsqrt.f32 %v2716_v40  ;;  %v4195_v29 = vand.u32 2147483648, %v4170_v2 }
 0x116   : > { %v2022_v52 = vpop.eup %2021  ;;  %vm4196_vm8 = vcmp.eq.f32.partialorder %v4170_v2, 0.0  ;;  %vm4197_vm15 = vcmp.eq.f32.partialorder %v4179_v44, inf  ;;  %v1104_v8 = vsel %vm1103_vm5, %v4182_v28, %v1102_v16  ;;  %vm1133_vm10 = vcmp.eq.f32.partialorder %v2699_v17, 0.0 }
 0x117   : > { %v3351_v15 = vsel %vm4196_vm8, %v4195_v29, %v1076_v51  ;;  %v1097_v47 = vsel %vm4197_vm15, %v4179_v44, %v1095_v48  ;;  %vm1140_vm3 = vcmp.eq.f32.partialorder %v2705_v55, 0.0  ;;  %2035 = vrsqrt.f32 %v2718_v57  ;;  %v2024_v16 = vpop.eup %2023 }
 0x118   : > { %v4198_v45 = vand.u32 2147483648, %v4173_v37  ;;  %vm4199_vm13 = vcmp.eq.f32.partialorder %v4173_v37, 0.0  ;;  %v1123_v51 = vmul.f32 %v2022_v52, %v2697_v11  ;;  %vm1147_vm8 = vcmp.eq.f32.partialorder %v2709_v61, 0.0 }
 0x119   : > { %vm1152_vm15 = vcmp.eq.f32.partialorder %v2711_v56, inf  ;;  %v1155_v48 = vand.u32 2147483648, %v2711_v56  ;;  %v4200_v29 = vand.u32 2147483648, %v4177_v10  ;;  %v1111_v37 = vsel %vm1110_vm14, %v4186_v18, %v1109_v33 }
 0x11a   : > { %v3366_v2 = vsel %vm4199_vm13, %v4198_v45, %v1083_v3  ;;  %vm1154_vm5 = vcmp.eq.f32.partialorder %v2711_v56, 0.0  ;;  %vm1159_vm13 = vcmp.eq.f32.partialorder %v2714_v54, inf  ;;  %2037 = vrsqrt.f32 %v2721_v24  ;;  %v2026_v3 = vpop.eup %2025 }
 0x11b   : > { %v3376_v1 = vsel %vm1091_vm12, %v4200_v29, %v1090_v20  ;;  %v4201_v52 = vand.u32 2147483648, %v4179_v44  ;;  %v4202_v10 = vand.u32 2147483648, %v4182_v28  ;;  %v1118_v33 = vsel %vm1117_vm1, %v4189_v23, %v1116_v27  ;;  %v2028_v28 = vpop.eup %2027 }
 0x11c   : > { %vm1161_vm12 = vcmp.eq.f32.partialorder %v2714_v54, 0.0  ;;  %v1162_v29 = vand.u32 2147483648, %v2714_v54  ;;  %v1125_v44 = vsel %vm1124_vm4, %v2697_v11, %v1123_v51  ;;  %2039 = vrsqrt.f32 %v2724_v5 }
 0x11d   : > { %v3388_v45 = vsel %vm1098_vm0, %v4201_v52, %v1097_v47  ;;  %v3394_v20 = vsel %vm1105_vm11, %v4202_v10, %v1104_v8  ;;  %v1130_v47 = vmul.f32 %v2024_v16, %v2699_v17  ;;  %v1137_v52 = vmul.f32 %v2026_v3, %v2705_v55 }
 0x11e   : > { %v4203_v8 = vand.u32 2147483648, %v4186_v18  ;;  %vm1166_vm11 = vcmp.eq.f32.partialorder %v2716_v40, inf  ;;  %vm1168_vm0 = vcmp.eq.f32.partialorder %v2716_v40, 0.0  ;;  %v1169_v51 = vand.u32 2147483648, %v2716_v40  ;;  %v2030_v18 = vpop.eup %2029 }
 0x11f   : > { %v4204_v16 = vand.u32 2147483648, %v4189_v23  ;;  %v1144_v10 = vmul.f32 %v2028_v28, %v2709_v61  ;;  %vm1173_vm14 = vcmp.eq.f32.partialorder %v2718_v57, inf  ;;  %2041 = vrsqrt.f32 %v2726_v38 }
 0x120   : > { %v3413_v27 = vsel %vm1112_vm9, %v4203_v8, %v1111_v37  ;;  %v3429_v37 = vsel %vm1126_vm7, %v1127_v49, %v1125_v44  ;;  %vm1175_vm1 = vcmp.eq.f32.partialorder %v2718_v57, 0.0  ;;  %v1176_v8 = vand.u32 2147483648, %v2718_v57  ;;  %v2032_v11 = vpop.eup %2031 }
 0x121   : > { %v3422_v3 = vsel %vm1119_vm2, %v4204_v16, %v1118_v33  ;;  %4205 = vst [vmem:[#allocation31_spill] sm:$0xff] %v3429_v37  ;;  %v1132_v23 = vsel %vm1131_vm6, %v2699_v17, %v1130_v47  ;;  %vm4206_vm2 = vcmp.eq.f32.partialorder %v2705_v55, inf  ;;  %v1151_v28 = vmul.f32 %v2030_v18, %v2711_v56 }
 0x122   : > { %v1139_v33 = vsel %vm4206_vm2, %v2705_v55, %v1137_v52  ;;  %vm1182_vm4 = vcmp.eq.f32.partialorder %v2721_v24, 0.0  ;;  %2043 = vrsqrt.f32 %v2730_v13  ;;  %vm4207_vm7 = vcmp.eq.f32.partialorder %v2709_v61, inf }
 0x123   : > { %v1146_v49 = vsel %vm4207_vm7, %v2709_v61, %v1144_v10  ;;  %v1183_v44 = vand.u32 2147483648, %v2721_v24  ;;  %vm1187_vm9 = vcmp.eq.f32.partialorder %v2724_v5, inf  ;;  %2045 = vrsqrt.f32 %v2732_v62 }
 0x124   : > { %v1153_v47 = vsel %vm1152_vm15, %v2711_v56, %v1151_v28  ;;  %v1158_v52 = vmul.f32 %v2032_v11, %v2714_v54  ;;  %vm1189_vm6 = vcmp.eq.f32.partialorder %v2724_v5, 0.0  ;;  %v1190_v16 = vand.u32 2147483648, %v2724_v5  ;;  %v2034_v28 = vpop.eup %2033 }
 0x125   : > { %v3459_v10 = vsel %vm1133_vm10, %v1134_v34, %v1132_v23  ;;  %v3465_v18 = vsel %vm1140_vm3, %v1141_v39, %v1139_v33  ;;  %vm1194_vm15 = vcmp.eq.f32.partialorder %v2726_v38, inf  ;;  %2047 = vrsqrt.f32 %v2734_v41  ;;  %v2036_v34 = vpop.eup %2035  ;;  %v4216_v33 = vld [vmem:[#allocation16_spill] sm:$0xff] }
 0x126   : > { %v4208_v11 = vand.u32 2147483648, %v2709_v61  ;;  %v1160_v17 = vsel %vm1159_vm13, %v2714_v54, %v1158_v52  ;;  %vm1196_vm10 = vcmp.eq.f32.partialorder %v2726_v38, 0.0  ;;  %v1197_v55 = vand.u32 2147483648, %v2726_v38 }
 0x127   : > { %2049 = vrsqrt.f32 %v2741_v25  ;;  %v3484_v39 = vsel %vm1154_vm5, %v1155_v48, %v1153_v47  ;;  %v1165_v61 = vmul.f32 %v2034_v28, %v2716_v40  ;;  %vm1201_vm3 = vcmp.eq.f32.partialorder %v2730_v13, inf  ;;  %v2038_v48 = vpop.eup %2037 }
 0x128   : > { %v3473_v37 = vsel %vm1147_vm8, %v4208_v11, %v1146_v49  ;;  %v3492_v49 = vsel %vm1161_vm12, %v1162_v29, %v1160_v17  ;;  %v1172_v52 = vmul.f32 %v2036_v34, %v2718_v57  ;;  %vm1203_vm8 = vcmp.eq.f32.partialorder %v2730_v13, 0.0 }
 0x129   : > { %vm1208_vm13 = vcmp.eq.f32.partialorder %v2732_v62, inf  ;;  %2051 = vrsqrt.f32 %v2743_v31  ;;  %v1167_v47 = vsel %vm1166_vm11, %v2716_v40, %v1165_v61  ;;  %vm1210_vm5 = vcmp.eq.f32.partialorder %v2732_v62, 0.0  ;;  %v2040_v54 = vpop.eup %2039  ;;  %v4229_v40 = vld [vmem:[#allocation25_spill] sm:$0xff] }
 0x12a   : > { %v3505_v28 = vstv %s1235_s27  ;;  %v3509_v11 = vsel %vm1168_vm0, %v1169_v51, %v1167_v47  ;;  %v1174_v17 = vsel %vm1173_vm14, %v2718_v57, %v1172_v52  ;;  %v1179_v34 = vmul.f32 %v2038_v48, %v2721_v24 }
 0x12b   : > { %vm1215_vm12 = vcmp.eq.f32.partialorder %v2734_v41, inf  ;;  %v3520_v29 = vsel %vm1175_vm1, %v1176_v8, %v1174_v17  ;;  %vm1217_vm11 = vcmp.eq.f32.partialorder %v2734_v41, 0.0  ;;  %vm1222_vm0 = vcmp.eq.f32.partialorder %v2741_v25, inf }
 0x12c   : > { %vm4209_vm14 = vcmp.eq.f32.partialorder %v2721_v24, inf  ;;  %v1186_v57 = vmul.f32 %v2040_v54, %v2724_v5  ;;  %vm1224_vm1 = vcmp.eq.f32.partialorder %v2741_v25, 0.0  ;;  %v2042_v17 = vpop.eup %2041  ;;  %vm1229_vm2 = vcmp.eq.f32.partialorder %v2743_v31, inf }
 0x12d   : > { %v1181_v48 = vsel %vm4209_vm14, %v2721_v24, %v1179_v34  ;;  %v1193_v47 = vmul.f32 %v2042_v17, %v2726_v38  ;;  %v4211_v17 = vld [vmem:[#allocation12_spill] sm:$0xff] }
 0x12e   : > { %v3541_v51 = vsel %vm1182_vm4, %v1183_v44, %v1181_v48  ;;  %v1188_v8 = vsel %vm1187_vm9, %v2724_v5, %v1186_v57  ;;  %vm1231_vm4 = vcmp.eq.f32.partialorder %v2743_v31, 0.0  ;;  %v4212_v5 = vld [vmem:[#allocation13_spill] sm:$0xff] }
 0x12f   : > { %4210 = vst [vmem:[#allocation32_spill] sm:$0xff] %v3541_v51  ;;  %v2044_v48 = vpop.eup %2043  ;;  %v3561_v34 = vsel %vm1189_vm6, %v1190_v16, %v1188_v8  ;;  %v1195_v24 = vsel %vm1194_vm15, %v2726_v38, %v1193_v47  ;;  %v4213_v8 = vld [vmem:[#allocation14_spill] sm:$0xff]  ;;  %v4221_v38 = vand.u32 2147483648, %v2732_v62  ;;  %v1264_v16 = vsub.f32 %v4229_v40, %v3505_v28  ;;  %v4234_v40 = vld [vmem:[#allocation28_spill] sm:$0xff] }
 0x130   : > { %v2046_v61 = vpop.eup %2045  ;;  %v1200_v44 = vmul.f32 %v2044_v48, %v2730_v13  ;;  %v3579_v52 = vsel %vm1196_vm10, %v1197_v55, %v1195_v24  ;;  %v4218_v24 = vand.u32 2147483648, %v2730_v13 }
 0x131   : > { %4214 = vst [vmem:[#allocation33_spill] sm:$0xff] %v3579_v52  ;;  %v1207_v57 = vmul.f32 %v2046_v61, %v2732_v62 }
 0x132   : > { %v2048_v23 = vpop.eup %2047  ;;  %v1202_v48 = vsel %vm1201_vm3, %v2730_v13, %v1200_v44  ;;  %v4232_v13 = vld [vmem:[#allocation26_spill] sm:$0xff] }
 0x133   : > { %v3599_v56 = vsel %vm1203_vm8, %v4218_v24, %v1202_v48  ;;  %v1209_v44 = vsel %vm1208_vm13, %v2732_v62, %v1207_v57  ;;  %v1214_v47 = vmul.f32 %v2048_v23, %v2734_v41  ;;  %v1262_v62 = vsub.f32 %v3134_v50, %v3505_v28 }
 0x134   : > { %v2050_v61 = vpop.eup %2049  ;;  %4219 = vst [vmem:[#allocation34_spill] sm:$0xff] %v3599_v56  ;;  %v3611_v55 = vsel %vm1210_vm5, %v4221_v38, %v1209_v44  ;;  %v4226_v38 = vld [vmem:[#allocation24_spill] sm:$0xff]  ;;  %v4227_v44 = vand.u32 2147483648, %v2734_v41  ;;  %v4230_v50 = vand.u32 2147483648, %v2741_v25  ;;  %v1268_v24 = vsub.f32 %v4234_v40, %v3505_v28 }
 0x135   : > { %4222 = vst [vmem:[#allocation35_spill] sm:$0xff] %v3611_v55  ;;  %v1221_v35 = vmul.f32 %v2050_v61, %v2741_v25  ;;  %v1216_v23 = vsel %vm1215_vm12, %v2734_v41, %v1214_v47  ;;  %v1263_v61 = vsub.f32 %v4226_v38, %v3505_v28  ;;  %v1265_v41 = vsub.f32 %v4232_v13, %v3505_v28  ;;  %v4271_v55 = vld [vmem:[#allocation23_spill] sm:$0xff] }
 0x136   : > { %v2052_v57 = vpop.eup %2051  ;;  %v3631_v48 = vsel %vm1217_vm11, %v4227_v44, %v1216_v23  ;;  %v1266_v23 = vsub.f32 %v3185_v22, %v3505_v28  ;;  %v4233_v44 = vld [vmem:[#allocation27_spill] sm:$0xff]  ;;  %v4236_v13 = vand.u32 2147483648, %v2743_v31  ;;  %v1273_v40 = vsub.f32 %v3273_v6, %v3505_v28 }
 0x137   : > { %4228 = vst [vmem:[#allocation36_spill] sm:$0xff] %v3631_v48  ;;  %v1223_v58 = vsel %vm1222_vm0, %v2741_v25, %v1221_v35  ;;  %v1228_v47 = vmul.f32 %v2052_v57, %v2743_v31  ;;  %v1267_v35 = vsub.f32 %v4233_v44, %v3505_v28  ;;  %v4235_v25 = vld [vmem:[#allocation29_spill] sm:$0xff]  ;;  %v4238_v44 = vld [vmem:[#allocation30_spill] sm:$0xff]  ;;  %v1280_v6 = vsub.f32 %v3376_v1, %v3505_v28 }
 0x138   : > { %v3643_v38 = vsel %vm1224_vm1, %v4230_v50, %v1223_v58  ;;  %v1269_v58 = vsub.f32 %v4235_v25, %v3505_v28  ;;  %v1270_v50 = vsub.f32 %v3234_v26, %v3505_v28  ;;  %v1271_v54 = vsub.f32 %v4238_v44, %v3505_v28 }
 0x139   : > { %4231 = vst [vmem:[#allocation37_spill] sm:$0xff] %v3643_v38  ;;  %v1230_v57 = vsel %vm1229_vm2, %v2743_v31, %v1228_v47  ;;  %v1272_v47 = vsub.f32 %v3265_v46, %v3505_v28  ;;  %v1274_v25 = vsub.f32 %v3299_v4, %v3505_v28  ;;  %v1275_v26 = vsub.f32 %v3311_v14, %v3505_v28 }
 0x13a   : > { %v3664_v22 = vsel %vm1231_vm4, %v4236_v13, %v1230_v57  ;;  %v1276_v31 = vsub.f32 %v3319_v0, %v3505_v28  ;;  %v1277_v57 = vsub.f32 %v3327_v60, %v3505_v28  ;;  %v1278_v13 = vsub.f32 %v3351_v15, %v3505_v28  ;;  %v4239_v15 = vld [vmem:[#allocation31_spill] sm:$0xff] }
 0x13b   : > { %4237 = vst [vmem:[#allocation9_spill] sm:$0xff] %v3664_v22  ;;  %v1279_v46 = vsub.f32 %v3366_v2, %v3505_v28  ;;  %v1281_v4 = vsub.f32 %v3388_v45, %v3505_v28  ;;  %v1282_v14 = vsub.f32 %v3394_v20, %v3505_v28  ;;  %v4240_v1 = vsub.f32 %v2823_v42, %v3505_v28 }
 0x13c   : > { %v4241_v45 = vsub.f32 %v2800_v12, %v3505_v28  ;;  %v4242_v20 = vsub.f32 %v2841_v63, %v3505_v28  ;;  %v4243_v0 = vsub.f32 %v2835_v21, %v3505_v28  ;;  %v4244_v44 = vsub.f32 %v2863_v19, %v3505_v28 }
 0x13d   : > { %v4245_v2 = vsub.f32 %v2850_v43, %v3505_v28  ;;  %v4246_v42 = vsub.f32 %v2893_v53, %v3505_v28  ;;  %v4247_v12 = vsub.f32 %v2881_v30, %v3505_v28  ;;  %v1372_v22 = vlaneseq }
 0x13e   : > { %v1365_v52 = vcombine.low %v4241_v45, %v4240_v1  ;;  %v1366_v60 = vcombine.low %v4243_v0, %v4242_v20  ;;  %v2146_v45 = vmov 1966171168   ;;  %v4248_v21 = vsub.f32 %v2915_v36, %v3505_v28 }
 0x13f   : > { %v1367_v38 = vcombine.low %v4245_v2, %v4244_v44  ;;  %v1368_v1 = vcombine.low %v4247_v12, %v4246_v42  ;;  %v1370_v63 = vunpack.c.l.s4 %v2146_v45  ;;  %v4249_v19 = vsub.f32 %v2904_v59, %v3505_v28  ;;  %v4257_v12 = vld [vmem:[#allocation15_spill] sm:$0xff] }
 0x140   : > { %v4250_v43 = vsub.f32 %v2938_v9, %v3505_v28  ;;  %v4251_v53 = vsub.f32 %v2926_v32, %v3505_v28  ;;  %v4252_v30 = vsub.f32 %v4211_v17, %v3505_v28  ;;  %v4253_v2 = vsub.f32 %v2949_v7, %v3505_v28 }
 0x141   : > { %v1414_v0 = vcombine.low %v4249_v19, %v4248_v21  ;;  %v4254_v36 = vsub.f32 %v4213_v8, %v3505_v28  ;;  %v4255_v59 = vsub.f32 %v4212_v5, %v3505_v28  ;;  %v4256_v9 = vsub.f32 %v4216_v33, %v3505_v28  ;;  %v4259_v21 = vld [vmem:[#allocation18_spill] sm:$0xff]  ;;  %v4261_v19 = vld [vmem:[#allocation17_spill] sm:$0xff] }
 0x142   : > { %v1415_v44 = vcombine.low %v4251_v53, %v4250_v43  ;;  %v1416_v20 = vcombine.low %v4253_v2, %v4252_v30  ;;  %v4258_v32 = vsub.f32 %v4257_v12, %v3505_v28  ;;  %v4260_v17 = vsub.f32 %v4259_v21, %v3505_v28  ;;  %v4263_v30 = vld [vmem:[#allocation20_spill] sm:$0xff]  ;;  %v4265_v2 = vld [vmem:[#allocation19_spill] sm:$0xff] }
 0x143   : > { %v1417_v42 = vcombine.low %v4255_v59, %v4254_v36  ;;  %v4262_v7 = vsub.f32 %v4261_v19, %v3505_v28  ;;  %v1371_v53 = vunpack.c.0.s8 %v1370_v63  ;;  %v1373_v8 = vshrl.u32 %v1372_v22, 7  ;;  %v4267_v59 = vld [vmem:[#allocation22_spill] sm:$0xff] }
 0x144   : > { %v1463_v45 = vcombine.low %v4258_v32, %v4256_v9  ;;  %v4264_v5 = vsub.f32 %v4263_v30, %v3505_v28  ;;  %v4266_v36 = vsub.f32 %v4265_v2, %v3505_v28  ;;  %v4268_v12 = vsub.f32 %v4267_v59, %v3505_v28  ;;  %v4269_v9 = vld [vmem:[#allocation21_spill] sm:$0xff] }
 0x145   : > { %v1464_v43 = vcombine.low %v4262_v7, %v4260_v17  ;;  %v4270_v32 = vsub.f32 %v4269_v9, %v3505_v28  ;;  %v4272_v19 = vsub.f32 %v4271_v55, %v3505_v28  ;;  %v1513_v63 = vcombine.low %v1263_v61, %v1264_v16 }
 0x146   : > { %v1465_v33 = vcombine.low %v4266_v36, %v4264_v5  ;;  %v1514_v22 = vcombine.low %v1265_v41, %v1266_v23  ;;  %v1515_v7 = vcombine.low %v1267_v35, %v1268_v24  ;;  %v3801_v48 = vsub.s32 %v1371_v53, %v1373_v8 }
 0x147   : > { %v1466_v21 = vcombine.low %v4270_v32, %v4268_v12  ;;  %v1512_v17 = vcombine.low %v4272_v19, %v1262_v62  ;;  %v1561_v30 = vcombine.low %v1269_v58, %v1270_v50  ;;  %v1562_v2 = vcombine.low %v1271_v54, %v1272_v47 }
 0x148   : > { %v1563_v5 = vcombine.low %v1273_v40, %v1274_v25  ;;  %v1564_v36 = vcombine.low %v1275_v26, %v1276_v31  ;;  %v1610_v56 = vcombine.low %v1277_v57, %v1278_v13  ;;  %v1611_v59 = vcombine.low %v1279_v46, %v1280_v6 }
 0x149   : > { %v1612_v51 = vcombine.low %v1281_v4, %v1282_v14  ;;  %v1375_v9 = vrot.slane %v1365_v52, %v3801_v48  ;;  %v1382_v12 = vrot.slane %v1366_v60, %v3801_v48  ;;  %v1389_v55 = vrot.slane %v1367_v38, %v3801_v48 }
 0x14a   : > { %v1396_v16 = vrot.slane %v1368_v1, %v3801_v48  ;;  %v1424_v24 = vrot.slane %v1414_v0, %v3801_v48  ;;  %v1431_v62 = vrot.slane %v1415_v44, %v3801_v48  ;;  %v1438_v61 = vrot.slane %v1416_v20, %v3801_v48 }
 0x14b   : > { %v1445_v54 = vrot.slane %v1417_v42, %v3801_v48  ;;  %v1397_v41 = vcombine.low %v1375_v9, %v1382_v12  ;;  %v1473_v35 = vrot.slane %v1463_v45, %v3801_v48  ;;  %v1480_v52 = vrot.slane %v1464_v43, %v3801_v48 }
 0x14c   : > { %v1398_v23 = vcombine.low %v1389_v55, %v1396_v16  ;;  %v1446_v58 = vcombine.low %v1424_v24, %v1431_v62  ;;  %v1487_v38 = vrot.slane %v1465_v33, %v3801_v48  ;;  %v1494_v47 = vrot.slane %v1466_v21, %v3801_v48 }
 0x14d   : > { %v1447_v50 = vcombine.low %v1438_v61, %v1445_v54  ;;  %v1405_v40 = vrot.slane %v1397_v41, %v3801_v48  ;;  %v1495_v26 = vcombine.low %v1473_v35, %v1480_v52  ;;  %v1522_v31 = vrot.slane %v1512_v17, %v3801_v48 }
 0x14e   : > { %v1412_v25 = vrot.slane %v1398_v23, %v3801_v48  ;;  %v1454_v57 = vrot.slane %v1446_v58, %v3801_v48  ;;  %v1496_v46 = vcombine.low %v1487_v38, %v1494_v47  ;;  %v1529_v6 = vrot.slane %v1513_v63, %v3801_v48  ;;  %v4286_v47 = vld [vmem:[#allocation34_spill] sm:$0xff] }
 0x14f   : > { %v1461_v13 = vrot.slane %v1447_v50, %v3801_v48  ;;  %v1503_v14 = vrot.slane %v1495_v26, %v3801_v48  ;;  %v1536_v60 = vrot.slane %v1514_v22, %v3801_v48  ;;  %v1543_v1 = vrot.slane %v1515_v7, %v3801_v48 }
 0x150   : > { %v1413_v4 = vcombine.low %v1405_v40, %v1412_v25  ;;  %v1510_v44 = vrot.slane %v1496_v46, %v3801_v48  ;;  %v1544_v20 = vcombine.low %v1522_v31, %v1529_v6  ;;  %v1571_v42 = vrot.slane %v1561_v30, %v3801_v48  ;;  %v4288_v25 = vld [vmem:[#allocation33_spill] sm:$0xff]  ;;  %v4292_v46 = vld [vmem:[#allocation35_spill] sm:$0xff] }
 0x151   : > { %v1462_v0 = vcombine.low %v1454_v57, %v1461_v13  ;;  %v1545_v45 = vcombine.low %v1536_v60, %v1543_v1  ;;  %v1578_v43 = vrot.slane %v1562_v2, %v3801_v48  ;;  %v1585_v53 = vrot.slane %v1563_v5, %v3801_v48  ;;  %v4290_v57 = vld [vmem:[#allocation36_spill] sm:$0xff]  ;;  %v4296_v1 = vld [vmem:[#allocation37_spill] sm:$0xff] }
 0x152   : > { %v1592_v8 = vrot.slane %v1564_v36, %v3801_v48  ;;  %1765 = vst [vmem:[%s3830_s5] sm:$0xff] %v1413_v4  ;;  %v1511_v33 = vcombine.low %v1503_v14, %v1510_v44  ;;  %v1552_v32 = vrot.slane %v1544_v20, %v3801_v48  ;;  %v4273_v21 = vsub.f32 %v3422_v3, %v3505_v28  ;;  %v4294_v14 = vld [vmem:[#allocation9_spill] sm:$0xff] }
 0x153   : > { %v4274_v19 = vsub.f32 %v3413_v27, %v3505_v28  ;;  %v1620_v63 = vrot.slane %v1610_v56, %v3801_v48  ;;  %1766 = vst [vmem:[%s3830_s5 + $0x8] sm:$0xff] %v1462_v0  ;;  %v1559_v22 = vrot.slane %v1545_v45, %v3801_v48  ;;  %v1593_v7 = vcombine.low %v1571_v42, %v1578_v43 }
 0x154   : > { %v1594_v30 = vcombine.low %v1585_v53, %v1592_v8  ;;  %v1627_v2 = vrot.slane %v1611_v59, %v3801_v48  ;;  %v1634_v5 = vrot.slane %v1612_v51, %v3801_v48  ;;  %v4275_v3 = vsub.f32 %v3459_v10, %v3505_v28  ;;  %1767 = vst [vmem:[%s3830_s5 + $0x10] sm:$0xff] %v1511_v33 }
 0x155   : > { %v1613_v17 = vcombine.low %v4274_v19, %v4273_v21  ;;  %v4276_v27 = vsub.f32 %v4239_v15, %v3505_v28  ;;  %v4277_v56 = vsub.f32 %v3473_v37, %v3505_v28  ;;  %v4278_v12 = vsub.f32 %v3465_v18, %v3505_v28 }
 0x156   : > { %v1560_v59 = vcombine.low %v1552_v32, %v1559_v22  ;;  %v1601_v51 = vrot.slane %v1593_v7, %v3801_v48  ;;  %v1608_v16 = vrot.slane %v1594_v30, %v3801_v48  ;;  %v1642_v24 = vcombine.low %v1620_v63, %v1627_v2 }
 0x157   : > { %v1641_v36 = vrot.slane %v1613_v17, %v3801_v48  ;;  %v1659_v9 = vcombine.low %v4276_v27, %v4275_v3  ;;  %v1660_v55 = vcombine.low %v4278_v12, %v4277_v56  ;;  %v4279_v15 = vsub.f32 %v3492_v49, %v3505_v28 }
 0x158   : > { %v4280_v62 = vsub.f32 %v3484_v39, %v3505_v28  ;;  %v4281_v37 = vsub.f32 %v3520_v29, %v3505_v28  ;;  %v4282_v18 = vsub.f32 %v3509_v11, %v3505_v28  ;;  %v1609_v23 = vcombine.low %v1601_v51, %v1608_v16  ;;  %v4284_v39 = vld [vmem:[#allocation32_spill] sm:$0xff]  ;;  %1768 = vst [vmem:[%s3830_s5 + $0x18] sm:$0xff] %v1560_v59 }
 0x159   : > { %v1643_v10 = vcombine.low %v1634_v5, %v1641_v36  ;;  %v1669_v41 = vrot.slane %v1659_v9, %v3801_v48  ;;  %v1650_v35 = vrot.slane %v1642_v24, %v3801_v48  ;;  %v1676_v52 = vrot.slane %v1660_v55, %v3801_v48 }
 0x15a   : > { %v1661_v61 = vcombine.low %v4280_v62, %v4279_v15  ;;  %v1662_v54 = vcombine.low %v4282_v18, %v4281_v37  ;;  %v4283_v49 = vsub.f32 %v3561_v34, %v3505_v28  ;;  %v4285_v58 = vsub.f32 %v4284_v39, %v3505_v28  ;;  %1769 = vst [vmem:[%s3830_s5 + $0x20] sm:$0xff] %v1609_v23 }
 0x15b   : > { %v1657_v29 = vrot.slane %v1643_v10, %v3801_v48  ;;  %v4287_v40 = vsub.f32 %v4286_v47, %v3505_v28  ;;  %v4289_v26 = vsub.f32 %v4288_v25, %v3505_v28  ;;  %v1691_v34 = vcombine.low %v1669_v41, %v1676_v52 }
 0x15c   : > { %v1708_v50 = vcombine.low %v4285_v58, %v4283_v49  ;;  %v1683_v11 = vrot.slane %v1661_v61, %v3801_v48  ;;  %v1690_v38 = vrot.slane %v1662_v54, %v3801_v48  ;;  %v4291_v13 = vsub.f32 %v4290_v57, %v3505_v28 }
 0x15d   : > { %v1709_v31 = vcombine.low %v4289_v26, %v4287_v40  ;;  %v4293_v6 = vsub.f32 %v4292_v46, %v3505_v28  ;;  %v4295_v60 = vsub.f32 %v4294_v14, %v3505_v28  ;;  %v4297_v0 = vsub.f32 %v4296_v1, %v3505_v28 }
 0x15e   : > { %v1718_v20 = vrot.slane %v1708_v50, %v3801_v48  ;;  %v1658_v42 = vcombine.low %v1650_v35, %v1657_v29  ;;  %v1692_v45 = vcombine.low %v1683_v11, %v1690_v38  ;;  %v1699_v53 = vrot.slane %v1691_v34, %v3801_v48 }
 0x15f   : > { %v1710_v4 = vcombine.low %v4293_v6, %v4291_v13  ;;  %v1711_v44 = vcombine.low %v4297_v0, %v4295_v60  ;;  %v1725_v43 = vrot.slane %v1709_v31, %v3801_v48 }
 0x160   : > { %v1706_v32 = vrot.slane %v1692_v45, %v3801_v48  ;;  %1770 = vst [vmem:[%s3830_s5 + $0x28] sm:$0xff] %v1658_v42 }
 0x161   : > { %v1732_v8 = vrot.slane %v1710_v4, %v3801_v48  ;;  %v1739_v33 = vrot.slane %v1711_v44, %v3801_v48  ;;  %v1740_v28 = vcombine.low %v1718_v20, %v1725_v43 }
 0x162   : > { %v1707_v19 = vcombine.low %v1699_v53, %v1706_v32 }
 0x163   : > { %v1741_v21 = vcombine.low %v1732_v8, %v1739_v33  ;;  %v1748_v17 = vrot.slane %v1740_v28, %v3801_v48 }
 0x164   : > { %1771 = vst [vmem:[%s3830_s5 + $0x30] sm:$0xff] %v1707_v19 }
 0x165   : > { %v1755_v63 = vrot.slane %v1741_v21, %v3801_v48  ;;  %1780 = sbr.rel (!%p4298_p6) target bundleno = 388 (0x184), region = 36 }
 0x167   : > { %v1756_v22 = vcombine.low %v1748_v17, %v1755_v63 }
 0x169   : > { %1772 = vst [vmem:[%s3830_s5 + $0x38] sm:$0xff] %v1756_v22 }
 0x16a   : > { %s4307_s8 = smov (!%p1783_p9, %s1782_s8), 64 }
 0x16b   : > { %s3920_s9 = sshll.u32 %s4307_s8, 4 }
 0x16c   : > { %s1787_s10 = ssub.s32 1024, %s3920_s9 }
 0x16d   : > { %1788 = vsyncadd %s1774_s6, %s1787_s10  ;;  %p1879_p10 = scmp.ne.s32.totalorder %s3920_s9, 0  ;;  %s1884_s21 = sshll.u32 %s2187_s0, 10 }
 0x16e   : > { %s1791_s18 = scalar_lea.hbm %s3967_s2, %s1884_s21  ;;  %s1793_s23 = sshll.u32 %s3830_s5, 4  ;;  %s1794_s23 = int_to_ptr.vmem [resolvable:$true] %s1793_s23 }
 0x16f   : > { %s2079_s24 = scalar_lea.vmem %s1794_s23, %s3920_s9  ;;  %s2147_s25 = smov [#allocation6]  }
 0x170   : > { %p2080_p13 = scmp.ne.s32.totalorder %s1794_s23, %s2079_s24  ;;  %s2083_s26 = sshll.u32 %s2147_s25, 4  ;;  %s2084_s26 = int_to_ptr.vmem [resolvable:$false] %s2083_s26 }
 0x171   : > { %s2085_s30 = scalar_lea.vmem %s2084_s26, 2048  ;;  %p2086_p8 = scmp.lt.s32.totalorder %s1794_s23, %s2084_s26 }
 0x172   : > { %p2081_p5 = pnand %p2080_p13, %p1879_p10  ;;  %p2087_p11 = scmp.lt.s32.totalorder %s2085_s30, %s2079_s24 }
 0x174   : > { %p2082_p7 = pneg %p2081_p5  ;;  %p2088_p12 = por %p2087_p11, %p2086_p8 }
 0x176   : > { %p2089_p0 = pnand %p2088_p12, %p2082_p7 }
 0x178   : > { %2092 = shalt.err (!%p2089_p0)
}
 0x179   : > { %s2093_s0 = scalar_lea.hbm %s1791_s18, %s3920_s9  ;;  %s2097_s20 = scalar_lea.hbm %s3967_s2, 2512 }
 0x17a   : > { %p2094_p1 = scmp.ne.s32.totalorder %s1791_s18, %s2093_s0  ;;  %p2098_p4 = scmp.lt.s32.totalorder %s1791_s18, %s3967_s2 }
 0x17b   : > { %p2099_p6 = scmp.lt.s32.totalorder %s2097_s20, %s2093_s0 }
 0x17c   : > { %p2095_p2 = pnand %p2094_p1, %p1879_p10 }
 0x17d   : > { %p2100_p9 = por %p2099_p6, %p2098_p4 }
 0x17e   : > { %p2096_p3 = pneg %p2095_p2 }
 0x180   : > { %p2101_p13 = pnand %p2100_p9, %p2096_p3 }
 0x182   : > { %2104 = shalt.err (!%p2101_p13)
}
 0x183   : > { %1796 = dma.vmem_to_hbm [thread:$0]  (%p1879_p10), %s1794_s23, %s3920_s9, %s1791_s18, %s1774_s6  }
 0x184 PF: > { %p1891_p5 = scmp.ge.s32.totalorder %s2143_s14, 2  ;;  %s1805_s5 = sand.u32 1, %s2131_s11  }
 0x185   : > { %p4299_p7 = scmp.ne.s32.totalorder %s4035_s22, 0  ;;  %s1806_s7 = scalar_lea.sflag [#allocation5], %s1805_s5 }
 0x187   : > { %p1888_p8 = pnand %p1891_p5, %p4299_p7 }
 0x189   : > { %p1889_p11 = pneg %p1888_p8 }
 0x18b   : > { %2126 = dma.done.wait (%p1889_p11), %s1806_s7, 1024  }
 0x18c   : > { %2128 = vsyncadd (%p1889_p11), %s1806_s7, 4294966272  ;;  %p16_p12 = scmp.ge.s32.totalorder %s2191_s16, 5   ;;  %s4300_s11 = smov %s2135_s12 }
 0x18d   : > { %s4301_s12 = smov %s2139_s13  ;;  %s4302_s13 = smov %s2203_s19 }
 0x18e   : > { %s4303_s14 = smov %s2191_s16  ;;  %18 = sbr.rel (!%p16_p12) target bundleno = 7 (0x7), region = 73 }
 0x193   :  { %1811 = vsyncpa [#allocation4], 1 }
 0x194   :  { %1813 = vsyncpa [#allocation4 + $0x1], 1 }
 0x195   :  { %1814 = vsyncpa [#allocation5], 1 }
 0x196   :  { %1816 = vsyncpa [#allocation5 + $0x1], 1 }

</bundles_post_ra>
